<compile_context>
chip_gen: v7x
topology: tpu7x:2x2x1
jax: 0.10.0
libtpu: 0.0.40
codegen_flags: <defaults>
</compile_context>

<pallas_src>
import functools

import jax
import jax.numpy as jnp
import numpy as np
from jax import lax
from jax.experimental import pallas as pl
from jax.experimental.pallas import tpu as pltpu


# ----------------------------- Pallas kernel ------------------------------ #

def _conv_block_kernel(*refs, n_seg, p_size, has_bias, do_norm, do_leaky,
                       do_sigmoid):
    """Fused Conv2d(4x4) [+ InstanceNorm] [+ LeakyReLU(0.2)] [+ sigmoid].

    refs (in order):
      d_ref : (1, K, L)      bf16 im2col block, K = 16*C_in (taps folded into
                             the contraction dim), L = P or N*P (lane-dense).
      w_ref : (C_out, K)     bf16 flattened weights (c, kh, kw ordering).
      b_ref : (C_out, 1)     f32 bias  -- only present when has_bias
                             (InstanceNorm cancels the bias exactly).
      o_ref : (1, C_out, L)  bf16 (intermediate) / f32 (final) output.
    """
    if has_bias:
        d_ref, w_ref, b_ref, o_ref = refs
    else:
        d_ref, w_ref, o_ref = refs
        b_ref = None

    # Single MXU matmul per block: the 16-tap accumulation lives inside the
    # systolic array (K = 16*C_in fills the contraction dim).
    x = jnp.dot(w_ref[...], d_ref[0], preferred_element_type=jnp.float32)

    if has_bias:
        x = x + b_ref[...]

    if do_norm:
        # InstanceNorm2d(affine=False, eps=1e-5, biased variance), one pass:
        # sum / sum-of-squares -> var = E[x^2] - mean^2 (clamped).
        inv_p = 1.0 / p_size
        if n_seg == 1:
            mean = jnp.sum(x, axis=1, keepdims=True) * inv_p
            ex2 = jnp.sum(x * x, axis=1, keepdims=True) * inv_p
        else:
            # Batch folded into the lane axis: per-sample stats via 0/1
            # segment-indicator matmuls (MXU) -- no misaligned lane slicing
            # or cross-lane rolls.
            L = n_seg * p_size
            lane = lax.broadcasted_iota(jnp.int32, (L, n_seg), 0)
            seg = lax.broadcasted_iota(jnp.int32, (L, n_seg), 1)
            s_fwd = ((lane >= seg * p_size) &
                     (lane < (seg + 1) * p_size)).astype(jnp.float32)
            lane_t = lax.broadcasted_iota(jnp.int32, (n_seg, L), 1)
            seg_t = lax.broadcasted_iota(jnp.int32, (n_seg, L), 0)
            s_bwd = ((lane_t >= seg_t * p_size) &
                     (lane_t < (seg_t + 1) * p_size)).astype(jnp.float32)
            mean_s = jnp.dot(x, s_fwd, preferred_element_type=jnp.float32) * inv_p
            ex2_s = jnp.dot(x * x, s_fwd, preferred_element_type=jnp.float32) * inv_p
            mean = jnp.dot(mean_s, s_bwd, preferred_element_type=jnp.float32)
            ex2 = jnp.dot(ex2_s, s_bwd, preferred_element_type=jnp.float32)
        var = jnp.maximum(ex2 - mean * mean, 0.0)     # clamp cancellation
        x = (x - mean) * lax.rsqrt(var + 1e-5)        # rsqrt on the EUP

    if do_leaky:
        x = jnp.where(x >= 0, x, 0.2 * x)
    if do_sigmoid:
        x = jax.nn.sigmoid(x)                          # exp on the EUP

    o_ref[0] = x.astype(o_ref.dtype)


# ------------------------------ layer wrapper ----------------------------- #

def conv_block(x_nchw, weight, bias, stride, *, do_norm, do_leaky, do_sigmoid,
               out_f32=False):
    """Conv2d(k=4, pad=1 reflect, stride) [+ InstanceNorm][+ LeakyReLU][+ sigmoid]."""
    N, C, H, W = x_nchw.shape
    C_out = weight.shape[0]
    k = 4

    xp = jnp.pad(x_nchw, ((0, 0), (0, 0), (1, 1), (1, 1)),
                 mode="reflect").astype(jnp.bfloat16)
    Hp, Wp = H + 2, W + 2
    Ho = (Hp - k) // stride + 1
    Wo = (Wp - k) // stride + 1
    P = Ho * Wo
    K = C * k * k

    # im2col with the 16 taps stacked along the contraction (K) axis, ordered
    # (c, kh, kw) to match weight.reshape(C_out, C*16).
    patches = [xp[:, :, kh:kh + stride * Ho:stride, kw:kw + stride * Wo:stride]
               for kh in range(k) for kw in range(k)]
    d = jnp.stack(patches, axis=2).reshape(N, K, P)        # (N, 16*C, P) bf16

    # Late layers have tiny P (64/16/9/4): fold the batch into the lane axis
    # so stores stay lane-dense (layer 2 becomes exactly 128 lanes).
    fold_batch = P < 128
    if fold_batch:
        d = d.transpose(1, 0, 2).reshape(1, K, N * P)
        grid_n, n_seg = 1, N
    else:
        grid_n, n_seg = N, 1
    L = d.shape[-1]

    w_flat = weight.reshape(C_out, K).astype(jnp.bfloat16)

    has_bias = not do_norm          # InstanceNorm cancels the bias exactly
    args = [d, w_flat]
    in_specs = [
        pl.BlockSpec((1, K, L), lambda n: (n, 0, 0)),
        pl.BlockSpec((C_out, K), lambda n: (0, 0)),
    ]
    if has_bias:
        args.append(bias.reshape(C_out, 1).astype(jnp.float32))
        in_specs.append(pl.BlockSpec((C_out, 1), lambda n: (0, 0)))

    out_dtype = jnp.float32 if out_f32 else jnp.bfloat16
    kernel = functools.partial(
        _conv_block_kernel, n_seg=n_seg, p_size=P, has_bias=has_bias,
        do_norm=do_norm, do_leaky=do_leaky, do_sigmoid=do_sigmoid)

    out = pl.pallas_call(
        kernel,
        out_shape=jax.ShapeDtypeStruct((grid_n, C_out, L), out_dtype),
        grid=(grid_n,),
        in_specs=in_specs,
        out_specs=pl.BlockSpec((1, C_out, L), lambda n: (n, 0, 0)),
        compiler_params=pltpu.CompilerParams(
            dimension_semantics=("parallel",)),
    )(*args)

    if fold_batch:
        out = out.reshape(C_out, N, Ho, Wo).transpose(1, 0, 2, 3)
    else:
        out = out.reshape(N, C_out, Ho, Wo)
    return out                                              # stays NCHW


# ------------------------------ model params ------------------------------ #

def make_layer_specs(in_channels, out_channels):
    """Static per-layer config: (cin, cout, stride, norm, leaky, sigmoid)."""
    specs = [(in_channels, out_channels[0], 2, False, True, False)]  # initial
    prev = out_channels[0]
    for c in out_channels[1:]:
        stride = 1 if c == out_channels[-1] else 2
        specs.append((prev, c, stride, True, True, False))           # Block
        prev = c
    specs.append((prev, 1, 1, False, False, True))                   # final
    return tuple(specs)


def init_params(key, specs):
    params = []
    for (cin, cout, _, _, _, _) in specs:
        key, k1, k2 = jax.random.split(key, 3)
        bound = 1.0 / np.sqrt(cin * 16)
        w = jax.random.uniform(k1, (cout, cin, 4, 4), jnp.float32, -bound, bound)
        b = jax.random.uniform(k2, (cout,), jnp.float32, -bound, bound)
        params.append((w, b))
    return params


def discriminator_forward(x, params, *, specs):
    # `specs` is static (bound via functools.partial before jit) so strides
    # and layer flags never become tracers.
    n_layers = len(specs)
    for i, ((w, b), (_, _, stride, norm, leaky, sig)) in enumerate(
            zip(params, specs)):
        x = conv_block(x, w, b, stride, do_norm=norm, do_leaky=leaky,
                       do_sigmoid=sig, out_f32=(i == n_layers - 1))
    return x


# ----------------------------- pure-JAX reference -------------------------- #

def reference_forward(x, params, specs):
    for (w, b), (_, _, stride, norm, leaky, sig) in zip(params, specs):
        xp = jnp.pad(x, ((0, 0), (0, 0), (1, 1), (1, 1)), mode="reflect")
        y = lax.conv_general_dilated(
            xp.astype(jnp.bfloat16), w.astype(jnp.bfloat16),
            (stride, stride), "VALID",
            dimension_numbers=("NCHW", "OIHW", "NCHW"),
            preferred_element_type=jnp.float32)
        y = y + b[None, :, None, None]
        if norm:
            mean = y.mean(axis=(2, 3), keepdims=True)
            var = jnp.square(y - mean).mean(axis=(2, 3), keepdims=True)
            y = (y - mean) / jnp.sqrt(var + 1e-5)
        if leaky:
            y = jnp.where(y >= 0, y, 0.2 * y)
        if sig:
            y = jax.nn.sigmoid(y)
        x = y
    return x


# ---------------------------------- main ----------------------------------- #

if __name__ == "__main__":
    key = jax.random.PRNGKey(0)
    k_x, k_p = jax.random.split(key)

    # Small shapes consistent with the module: N=2, C_in=3, 32x32 spatial,
    # scaled-down channel ladder (8, 16, 32, 64).
    in_channels = 3
    out_channels = (8, 16, 32, 64)
    x = jax.random.normal(k_x, (2, in_channels, 32, 32), jnp.float32)

    specs = make_layer_specs(in_channels, out_channels)
    params = init_params(k_p, specs)

    fwd = jax.jit(functools.partial(discriminator_forward, specs=specs))
    out = jax.block_until_ready(fwd(x, params))

    # sanity check vs pure-JAX reference (tolerance sized for bf16 matmuls /
    # bf16 inter-layer activations)
    ref = jax.block_until_ready(reference_forward(x, params, specs))
    np.testing.assert_allclose(np.asarray(out), np.asarray(ref),
                               rtol=5e-2, atol=3e-2)
    assert out.shape == (2, 1, 2, 2), out.shape

    print("KERNEL_OK")
</pallas_src>

<mosaic_0001>
module attributes {stable_mosaic.version = 11 : i64} {
  func.func @_conv_block_kernel(%arg0: i32, %arg1: memref<1x48x256xbf16, #tpu.memory_space<vmem>>, %arg2: memref<8x48xbf16, #tpu.memory_space<vmem>>, %arg3: memref<8x1xf32, #tpu.memory_space<vmem>>, %arg4: memref<1x8x256xbf16, #tpu.memory_space<vmem>>) attributes {dimension_semantics = [#tpu.dimension_semantics<parallel>], iteration_bounds = array<i64: 2>, scalar_prefetch = 0 : i64, scratch_operands = 0 : i64, tpu.core_type = #tpu.core_type<tc>, window_params = [{transform_indices = @transform_0, window_bounds = array<i64: 1, 48, 256>}, {pipeline_mode = #tpu.pipeline_mode<synchronous>, transform_indices = @transform_1, window_bounds = array<i64: 8, 48>}, {pipeline_mode = #tpu.pipeline_mode<synchronous>, transform_indices = @transform_2, window_bounds = array<i64: 8, 1>}, {transform_indices = @transform_3, window_bounds = array<i64: 1, 8, 256>}]} {
    %c0 = arith.constant 0 : index
    %c0_0 = arith.constant 0 : index
    %0 = vector.load %arg2[%c0, %c0_0] : memref<8x48xbf16, #tpu.memory_space<vmem>>, vector<8x48xbf16>
    %c0_1 = arith.constant 0 : index
    %c0_2 = arith.constant 0 : index
    %c0_3 = arith.constant 0 : index
    %1 = vector.load %arg1[%c0_1, %c0_2, %c0_3] : memref<1x48x256xbf16, #tpu.memory_space<vmem>>, vector<1x48x256xbf16>
    %2 = vector.shape_cast %1 : vector<1x48x256xbf16> to vector<48x256xbf16>
    %cst = arith.constant dense<0.000000e+00> : vector<8x256xf32>
    %3 = tpu.matmul %0, %2, %cst {dimension_numbers = #tpu.dot_dimension_numbers<[1], [0], [0], [1], [0, 0, 1, 1], [], []>} : vector<8x48xbf16>, vector<48x256xbf16>, vector<8x256xf32> -> vector<8x256xf32>
    %c0_4 = arith.constant 0 : index
    %c0_5 = arith.constant 0 : index
    %4 = vector.load %arg3[%c0_4, %c0_5] : memref<8x1xf32, #tpu.memory_space<vmem>>, vector<8x1xf32>
    %5 = vector.broadcast %4 : vector<8x1xf32> to vector<8x256xf32>
    %6 = arith.addf %3, %5 : vector<8x256xf32>
    %cst_6 = arith.constant 0.000000e+00 : f32
    %7 = vector.broadcast %cst_6 : f32 to vector<8x256xf32>
    %8 = arith.cmpf oge, %6, %7 : vector<8x256xf32>
    %cst_7 = arith.constant 2.000000e-01 : f32
    %9 = vector.broadcast %cst_7 : f32 to vector<8x256xf32>
    %10 = arith.mulf %9, %6 : vector<8x256xf32>
    %11 = arith.select %8, %6, %10 : vector<8x256xi1>, vector<8x256xf32>
    %12 = arith.truncf %11 : vector<8x256xf32> to vector<8x256xbf16>
    %c0_8 = arith.constant 0 : index
    %c0_9 = arith.constant 0 : index
    %c0_10 = arith.constant 0 : index
    %13 = vector.load %arg4[%c0_8, %c0_9, %c0_10] : memref<1x8x256xbf16, #tpu.memory_space<vmem>>, vector<1x8x256xbf16>
    %14 = vector.shape_cast %13 : vector<1x8x256xbf16> to vector<8x256xbf16>
    %15 = vector.shape_cast %12 : vector<8x256xbf16> to vector<1x8x256xbf16>
    tpu.vector_store %arg4[%c0_8, %c0_9, %c0_10], %15 {strides = array<i32>} : memref<1x8x256xbf16, #tpu.memory_space<vmem>>, vector<1x8x256xbf16>,
    return
  }
  func.func @transform_0(%arg0: i32) -> (i32, i32, i32) {
    %c0_i32 = arith.constant 0 : i32
    %c0_i32_0 = arith.constant 0 : i32
    %c0_i32_1 = arith.constant 0 : i32
    return %arg0, %c0_i32, %c0_i32_0 : i32, i32, i32
  }
  func.func @transform_1(%arg0: i32) -> (i32, i32) {
    %c0_i32 = arith.constant 0 : i32
    %c0_i32_0 = arith.constant 0 : i32
    %c0_i32_1 = arith.constant 0 : i32
    return %c0_i32, %c0_i32_0 : i32, i32
  }
  func.func @transform_2(%arg0: i32) -> (i32, i32) {
    %c0_i32 = arith.constant 0 : i32
    %c0_i32_0 = arith.constant 0 : i32
    %c0_i32_1 = arith.constant 0 : i32
    return %c0_i32, %c0_i32_0 : i32, i32
  }
  func.func @transform_3(%arg0: i32) -> (i32, i32, i32) {
    %c0_i32 = arith.constant 0 : i32
    %c0_i32_0 = arith.constant 0 : i32
    %c0_i32_1 = arith.constant 0 : i32
    return %arg0, %c0_i32, %c0_i32_0 : i32, i32, i32
  }
}

module attributes {stable_mosaic.version = 11 : i64} {
  func.func @_conv_block_kernel(%arg0: i32, %arg1: memref<1x128x128xbf16, #tpu.memory_space<vmem>>, %arg2: memref<16x128xbf16, #tpu.memory_space<vmem>>, %arg3: memref<1x16x128xbf16, #tpu.memory_space<vmem>>) attributes {dimension_semantics = [#tpu.dimension_semantics<parallel>], iteration_bounds = array<i64: 1>, scalar_prefetch = 0 : i64, scratch_operands = 0 : i64, tpu.core_type = #tpu.core_type<tc>, window_params = [{transform_indices = @transform_0, window_bounds = array<i64: 1, 128, 128>}, {pipeline_mode = #tpu.pipeline_mode<synchronous>, transform_indices = @transform_1, window_bounds = array<i64: 16, 128>}, {transform_indices = @transform_2, window_bounds = array<i64: 1, 16, 128>}]} {
    %c0 = arith.constant 0 : index
    %c0_0 = arith.constant 0 : index
    %0 = vector.load %arg2[%c0, %c0_0] : memref<16x128xbf16, #tpu.memory_space<vmem>>, vector<16x128xbf16>
    %c0_1 = arith.constant 0 : index
    %c0_2 = arith.constant 0 : index
    %c0_3 = arith.constant 0 : index
    %1 = vector.load %arg1[%c0_1, %c0_2, %c0_3] : memref<1x128x128xbf16, #tpu.memory_space<vmem>>, vector<1x128x128xbf16>
    %2 = vector.shape_cast %1 : vector<1x128x128xbf16> to vector<128x128xbf16>
    %cst = arith.constant dense<0.000000e+00> : vector<16x128xf32>
    %3 = tpu.matmul %0, %2, %cst {dimension_numbers = #tpu.dot_dimension_numbers<[1], [0], [0], [1], [0, 0, 1, 1], [], []>} : vector<16x128xbf16>, vector<128x128xbf16>, vector<16x128xf32> -> vector<16x128xf32>
    %4 = tpu.iota {dimensions = array<i32: 0>} : vector<128x2xi32>
    %5 = tpu.iota {dimensions = array<i32: 1>} : vector<128x2xi32>
    %c64_i32 = arith.constant 64 : i32
    %6 = vector.broadcast %c64_i32 : i32 to vector<128x2xi32>
    %7 = arith.muli %5, %6 : vector<128x2xi32>
    %8 = arith.cmpi sge, %4, %7 : vector<128x2xi32>
    %c1_i32 = arith.constant 1 : i32
    %9 = vector.broadcast %c1_i32 : i32 to vector<128x2xi32>
    %10 = arith.addi %5, %9 : vector<128x2xi32>
    %c64_i32_4 = arith.constant 64 : i32
    %11 = vector.broadcast %c64_i32_4 : i32 to vector<128x2xi32>
    %12 = arith.muli %10, %11 : vector<128x2xi32>
    %13 = arith.cmpi slt, %4, %12 : vector<128x2xi32>
    %14 = arith.andi %8, %13 : vector<128x2xi1>
    %15 = arith.extui %14 : vector<128x2xi1> to vector<128x2xi32>
    %16 = arith.sitofp %15 : vector<128x2xi32> to vector<128x2xf32>
    %17 = tpu.iota {dimensions = array<i32: 1>} : vector<2x128xi32>
    %18 = tpu.iota {dimensions = array<i32: 0>} : vector<2x128xi32>
    %c64_i32_5 = arith.constant 64 : i32
    %19 = vector.broadcast %c64_i32_5 : i32 to vector<2x128xi32>
    %20 = arith.muli %18, %19 : vector<2x128xi32>
    %21 = arith.cmpi sge, %17, %20 : vector<2x128xi32>
    %c1_i32_6 = arith.constant 1 : i32
    %22 = vector.broadcast %c1_i32_6 : i32 to vector<2x128xi32>
    %23 = arith.addi %18, %22 : vector<2x128xi32>
    %c64_i32_7 = arith.constant 64 : i32
    %24 = vector.broadcast %c64_i32_7 : i32 to vector<2x128xi32>
    %25 = arith.muli %23, %24 : vector<2x128xi32>
    %26 = arith.cmpi slt, %17, %25 : vector<2x128xi32>
    %27 = arith.andi %21, %26 : vector<2x128xi1>
    %28 = arith.extui %27 : vector<2x128xi1> to vector<2x128xi32>
    %29 = arith.sitofp %28 : vector<2x128xi32> to vector<2x128xf32>
    %cst_8 = arith.constant dense<0.000000e+00> : vector<16x2xf32>
    %30 = tpu.matmul %3, %16, %cst_8 {dimension_numbers = #tpu.dot_dimension_numbers<[1], [0], [0], [1], [0, 0, 1, 1], [], []>} : vector<16x128xf32>, vector<128x2xf32>, vector<16x2xf32> -> vector<16x2xf32>
    %cst_9 = arith.constant 1.562500e-02 : f32
    %31 = vector.broadcast %cst_9 : f32 to vector<16x2xf32>
    %32 = arith.mulf %30, %31 : vector<16x2xf32>
    %33 = arith.mulf %3, %3 : vector<16x128xf32>
    %cst_10 = arith.constant dense<0.000000e+00> : vector<16x2xf32>
    %34 = tpu.matmul %33, %16, %cst_10 {dimension_numbers = #tpu.dot_dimension_numbers<[1], [0], [0], [1], [0, 0, 1, 1], [], []>} : vector<16x128xf32>, vector<128x2xf32>, vector<16x2xf32> -> vector<16x2xf32>
    %cst_11 = arith.constant 1.562500e-02 : f32
    %35 = vector.broadcast %cst_11 : f32 to vector<16x2xf32>
    %36 = arith.mulf %34, %35 : vector<16x2xf32>
    %cst_12 = arith.constant dense<0.000000e+00> : vector<16x128xf32>
    %37 = tpu.matmul %32, %29, %cst_12 {dimension_numbers = #tpu.dot_dimension_numbers<[1], [0], [0], [1], [0, 0, 1, 1], [], []>} : vector<16x2xf32>, vector<2x128xf32>, vector<16x128xf32> -> vector<16x128xf32>
    %cst_13 = arith.constant dense<0.000000e+00> : vector<16x128xf32>
    %38 = tpu.matmul %36, %29, %cst_13 {dimension_numbers = #tpu.dot_dimension_numbers<[1], [0], [0], [1], [0, 0, 1, 1], [], []>} : vector<16x2xf32>, vector<2x128xf32>, vector<16x128xf32> -> vector<16x128xf32>
    %39 = arith.mulf %37, %37 : vector<16x128xf32>
    %40 = arith.subf %38, %39 : vector<16x128xf32>
    %cst_14 = arith.constant 0.000000e+00 : f32
    %41 = vector.broadcast %cst_14 : f32 to vector<16x128xf32>
    %42 = arith.maximumf %40, %41 : vector<16x128xf32>
    %43 = arith.subf %3, %37 : vector<16x128xf32>
    %cst_15 = arith.constant 9.99999974E-6 : f32
    %44 = vector.broadcast %cst_15 : f32 to vector<16x128xf32>
    %45 = arith.addf %42, %44 : vector<16x128xf32>
    %46 = math.rsqrt %45 : vector<16x128xf32>
    %47 = arith.mulf %43, %46 : vector<16x128xf32>
    %cst_16 = arith.constant 0.000000e+00 : f32
    %48 = vector.broadcast %cst_16 : f32 to vector<16x128xf32>
    %49 = arith.cmpf oge, %47, %48 : vector<16x128xf32>
    %cst_17 = arith.constant 2.000000e-01 : f32
    %50 = vector.broadcast %cst_17 : f32 to vector<16x128xf32>
    %51 = arith.mulf %50, %47 : vector<16x128xf32>
    %52 = arith.select %49, %47, %51 : vector<16x128xi1>, vector<16x128xf32>
    %53 = arith.truncf %52 : vector<16x128xf32> to vector<16x128xbf16>
    %c0_18 = arith.constant 0 : index
    %c0_19 = arith.constant 0 : index
    %c0_20 = arith.constant 0 : index
    %54 = vector.load %arg3[%c0_18, %c0_19, %c0_20] : memref<1x16x128xbf16, #tpu.memory_space<vmem>>, vector<1x16x128xbf16>
    %55 = vector.shape_cast %54 : vector<1x16x128xbf16> to vector<16x128xbf16>
    %56 = vector.shape_cast %53 : vector<16x128xbf16> to vector<1x16x128xbf16>
    tpu.vector_store %arg3[%c0_18, %c0_19, %c0_20], %56 {strides = array<i32>} : memref<1x16x128xbf16, #tpu.memory_space<vmem>>, vector<1x16x128xbf16>,
    return
  }
  func.func @transform_0(%arg0: i32) -> (i32, i32, i32) {
    %c0_i32 = arith.constant 0 : i32
    %c0_i32_0 = arith.constant 0 : i32
    %c0_i32_1 = arith.constant 0 : i32
    return %arg0, %c0_i32, %c0_i32_0 : i32, i32, i32
  }
  func.func @transform_1(%arg0: i32) -> (i32, i32) {
    %c0_i32 = arith.constant 0 : i32
    %c0_i32_0 = arith.constant 0 : i32
    %c0_i32_1 = arith.constant 0 : i32
    return %c0_i32, %c0_i32_0 : i32, i32
  }
  func.func @transform_2(%arg0: i32) -> (i32, i32, i32) {
    %c0_i32 = arith.constant 0 : i32
    %c0_i32_0 = arith.constant 0 : i32
    %c0_i32_1 = arith.constant 0 : i32
    return %arg0, %c0_i32, %c0_i32_0 : i32, i32, i32
  }
}

module attributes {stable_mosaic.version = 11 : i64} {
  func.func @_conv_block_kernel(%arg0: i32, %arg1: memref<1x256x32xbf16, #tpu.memory_space<vmem>>, %arg2: memref<32x256xbf16, #tpu.memory_space<vmem>>, %arg3: memref<1x32x32xbf16, #tpu.memory_space<vmem>>) attributes {dimension_semantics = [#tpu.dimension_semantics<parallel>], iteration_bounds = array<i64: 1>, scalar_prefetch = 0 : i64, scratch_operands = 0 : i64, tpu.core_type = #tpu.core_type<tc>, window_params = [{transform_indices = @transform_0, window_bounds = array<i64: 1, 256, 32>}, {pipeline_mode = #tpu.pipeline_mode<synchronous>, transform_indices = @transform_1, window_bounds = array<i64: 32, 256>}, {transform_indices = @transform_2, window_bounds = array<i64: 1, 32, 32>}]} {
    %c0 = arith.constant 0 : index
    %c0_0 = arith.constant 0 : index
    %0 = vector.load %arg2[%c0, %c0_0] : memref<32x256xbf16, #tpu.memory_space<vmem>>, vector<32x256xbf16>
    %c0_1 = arith.constant 0 : index
    %c0_2 = arith.constant 0 : index
    %c0_3 = arith.constant 0 : index
    %1 = vector.load %arg1[%c0_1, %c0_2, %c0_3] : memref<1x256x32xbf16, #tpu.memory_space<vmem>>, vector<1x256x32xbf16>
    %2 = vector.shape_cast %1 : vector<1x256x32xbf16> to vector<256x32xbf16>
    %cst = arith.constant dense<0.000000e+00> : vector<32x32xf32>
    %3 = tpu.matmul %0, %2, %cst {dimension_numbers = #tpu.dot_dimension_numbers<[1], [0], [0], [1], [0, 0, 1, 1], [], []>} : vector<32x256xbf16>, vector<256x32xbf16>, vector<32x32xf32> -> vector<32x32xf32>
    %4 = tpu.iota {dimensions = array<i32: 0>} : vector<32x2xi32>
    %5 = tpu.iota {dimensions = array<i32: 1>} : vector<32x2xi32>
    %c16_i32 = arith.constant 16 : i32
    %6 = vector.broadcast %c16_i32 : i32 to vector<32x2xi32>
    %7 = arith.muli %5, %6 : vector<32x2xi32>
    %8 = arith.cmpi sge, %4, %7 : vector<32x2xi32>
    %c1_i32 = arith.constant 1 : i32
    %9 = vector.broadcast %c1_i32 : i32 to vector<32x2xi32>
    %10 = arith.addi %5, %9 : vector<32x2xi32>
    %c16_i32_4 = arith.constant 16 : i32
    %11 = vector.broadcast %c16_i32_4 : i32 to vector<32x2xi32>
    %12 = arith.muli %10, %11 : vector<32x2xi32>
    %13 = arith.cmpi slt, %4, %12 : vector<32x2xi32>
    %14 = arith.andi %8, %13 : vector<32x2xi1>
    %15 = arith.extui %14 : vector<32x2xi1> to vector<32x2xi32>
    %16 = arith.sitofp %15 : vector<32x2xi32> to vector<32x2xf32>
    %17 = tpu.iota {dimensions = array<i32: 1>} : vector<2x32xi32>
    %18 = tpu.iota {dimensions = array<i32: 0>} : vector<2x32xi32>
    %c16_i32_5 = arith.constant 16 : i32
    %19 = vector.broadcast %c16_i32_5 : i32 to vector<2x32xi32>
    %20 = arith.muli %18, %19 : vector<2x32xi32>
    %21 = arith.cmpi sge, %17, %20 : vector<2x32xi32>
    %c1_i32_6 = arith.constant 1 : i32
    %22 = vector.broadcast %c1_i32_6 : i32 to vector<2x32xi32>
    %23 = arith.addi %18, %22 : vector<2x32xi32>
    %c16_i32_7 = arith.constant 16 : i32
    %24 = vector.broadcast %c16_i32_7 : i32 to vector<2x32xi32>
    %25 = arith.muli %23, %24 : vector<2x32xi32>
    %26 = arith.cmpi slt, %17, %25 : vector<2x32xi32>
    %27 = arith.andi %21, %26 : vector<2x32xi1>
    %28 = arith.extui %27 : vector<2x32xi1> to vector<2x32xi32>
    %29 = arith.sitofp %28 : vector<2x32xi32> to vector<2x32xf32>
    %cst_8 = arith.constant dense<0.000000e+00> : vector<32x2xf32>
    %30 = tpu.matmul %3, %16, %cst_8 {dimension_numbers = #tpu.dot_dimension_numbers<[1], [0], [0], [1], [0, 0, 1, 1], [], []>} : vector<32x32xf32>, vector<32x2xf32>, vector<32x2xf32> -> vector<32x2xf32>
    %cst_9 = arith.constant 6.250000e-02 : f32
    %31 = vector.broadcast %cst_9 : f32 to vector<32x2xf32>
    %32 = arith.mulf %30, %31 : vector<32x2xf32>
    %33 = arith.mulf %3, %3 : vector<32x32xf32>
    %cst_10 = arith.constant dense<0.000000e+00> : vector<32x2xf32>
    %34 = tpu.matmul %33, %16, %cst_10 {dimension_numbers = #tpu.dot_dimension_numbers<[1], [0], [0], [1], [0, 0, 1, 1], [], []>} : vector<32x32xf32>, vector<32x2xf32>, vector<32x2xf32> -> vector<32x2xf32>
    %cst_11 = arith.constant 6.250000e-02 : f32
    %35 = vector.broadcast %cst_11 : f32 to vector<32x2xf32>
    %36 = arith.mulf %34, %35 : vector<32x2xf32>
    %cst_12 = arith.constant dense<0.000000e+00> : vector<32x32xf32>
    %37 = tpu.matmul %32, %29, %cst_12 {dimension_numbers = #tpu.dot_dimension_numbers<[1], [0], [0], [1], [0, 0, 1, 1], [], []>} : vector<32x2xf32>, vector<2x32xf32>, vector<32x32xf32> -> vector<32x32xf32>
    %cst_13 = arith.constant dense<0.000000e+00> : vector<32x32xf32>
    %38 = tpu.matmul %36, %29, %cst_13 {dimension_numbers = #tpu.dot_dimension_numbers<[1], [0], [0], [1], [0, 0, 1, 1], [], []>} : vector<32x2xf32>, vector<2x32xf32>, vector<32x32xf32> -> vector<32x32xf32>
    %39 = arith.mulf %37, %37 : vector<32x32xf32>
    %40 = arith.subf %38, %39 : vector<32x32xf32>
    %cst_14 = arith.constant 0.000000e+00 : f32
    %41 = vector.broadcast %cst_14 : f32 to vector<32x32xf32>
    %42 = arith.maximumf %40, %41 : vector<32x32xf32>
    %43 = arith.subf %3, %37 : vector<32x32xf32>
    %cst_15 = arith.constant 9.99999974E-6 : f32
    %44 = vector.broadcast %cst_15 : f32 to vector<32x32xf32>
    %45 = arith.addf %42, %44 : vector<32x32xf32>
    %46 = math.rsqrt %45 : vector<32x32xf32>
    %47 = arith.mulf %43, %46 : vector<32x32xf32>
    %cst_16 = arith.constant 0.000000e+00 : f32
    %48 = vector.broadcast %cst_16 : f32 to vector<32x32xf32>
    %49 = arith.cmpf oge, %47, %48 : vector<32x32xf32>
    %cst_17 = arith.constant 2.000000e-01 : f32
    %50 = vector.broadcast %cst_17 : f32 to vector<32x32xf32>
    %51 = arith.mulf %50, %47 : vector<32x32xf32>
    %52 = arith.select %49, %47, %51 : vector<32x32xi1>, vector<32x32xf32>
    %53 = arith.truncf %52 : vector<32x32xf32> to vector<32x32xbf16>
    %c0_18 = arith.constant 0 : index
    %c0_19 = arith.constant 0 : index
    %c0_20 = arith.constant 0 : index
    %54 = vector.load %arg3[%c0_18, %c0_19, %c0_20] : memref<1x32x32xbf16, #tpu.memory_space<vmem>>, vector<1x32x32xbf16>
    %55 = vector.shape_cast %54 : vector<1x32x32xbf16> to vector<32x32xbf16>
    %56 = vector.shape_cast %53 : vector<32x32xbf16> to vector<1x32x32xbf16>
    tpu.vector_store %arg3[%c0_18, %c0_19, %c0_20], %56 {strides = array<i32>} : memref<1x32x32xbf16, #tpu.memory_space<vmem>>, vector<1x32x32xbf16>,
    return
  }
  func.func @transform_0(%arg0: i32) -> (i32, i32, i32) {
    %c0_i32 = arith.constant 0 : i32
    %c0_i32_0 = arith.constant 0 : i32
    %c0_i32_1 = arith.constant 0 : i32
    return %arg0, %c0_i32, %c0_i32_0 : i32, i32, i32
  }
  func.func @transform_1(%arg0: i32) -> (i32, i32) {
    %c0_i32 = arith.constant 0 : i32
    %c0_i32_0 = arith.constant 0 : i32
    %c0_i32_1 = arith.constant 0 : i32
    return %c0_i32, %c0_i32_0 : i32, i32
  }
  func.func @transform_2(%arg0: i32) -> (i32, i32, i32) {
    %c0_i32 = arith.constant 0 : i32
    %c0_i32_0 = arith.constant 0 : i32
    %c0_i32_1 = arith.constant 0 : i32
    return %arg0, %c0_i32, %c0_i32_0 : i32, i32, i32
  }
}

module attributes {stable_mosaic.version = 11 : i64} {
  func.func @_conv_block_kernel(%arg0: i32, %arg1: memref<1x512x18xbf16, #tpu.memory_space<vmem>>, %arg2: memref<64x512xbf16, #tpu.memory_space<vmem>>, %arg3: memref<1x64x18xbf16, #tpu.memory_space<vmem>>) attributes {dimension_semantics = [#tpu.dimension_semantics<parallel>], iteration_bounds = array<i64: 1>, scalar_prefetch = 0 : i64, scratch_operands = 0 : i64, tpu.core_type = #tpu.core_type<tc>, window_params = [{transform_indices = @transform_0, window_bounds = array<i64: 1, 512, 18>}, {pipeline_mode = #tpu.pipeline_mode<synchronous>, transform_indices = @transform_1, window_bounds = array<i64: 64, 512>}, {transform_indices = @transform_2, window_bounds = array<i64: 1, 64, 18>}]} {
    %c0 = arith.constant 0 : index
    %c0_0 = arith.constant 0 : index
    %0 = vector.load %arg2[%c0, %c0_0] : memref<64x512xbf16, #tpu.memory_space<vmem>>, vector<64x512xbf16>
    %c0_1 = arith.constant 0 : index
    %c0_2 = arith.constant 0 : index
    %c0_3 = arith.constant 0 : index
    %1 = vector.load %arg1[%c0_1, %c0_2, %c0_3] : memref<1x512x18xbf16, #tpu.memory_space<vmem>>, vector<1x512x18xbf16>
    %2 = vector.shape_cast %1 : vector<1x512x18xbf16> to vector<512x18xbf16>
    %cst = arith.constant dense<0.000000e+00> : vector<64x18xf32>
    %3 = tpu.matmul %0, %2, %cst {dimension_numbers = #tpu.dot_dimension_numbers<[1], [0], [0], [1], [0, 0, 1, 1], [], []>} : vector<64x512xbf16>, vector<512x18xbf16>, vector<64x18xf32> -> vector<64x18xf32>
    %4 = tpu.iota {dimensions = array<i32: 0>} : vector<18x2xi32>
    %5 = tpu.iota {dimensions = array<i32: 1>} : vector<18x2xi32>
    %c9_i32 = arith.constant 9 : i32
    %6 = vector.broadcast %c9_i32 : i32 to vector<18x2xi32>
    %7 = arith.muli %5, %6 : vector<18x2xi32>
    %8 = arith.cmpi sge, %4, %7 : vector<18x2xi32>
    %c1_i32 = arith.constant 1 : i32
    %9 = vector.broadcast %c1_i32 : i32 to vector<18x2xi32>
    %10 = arith.addi %5, %9 : vector<18x2xi32>
    %c9_i32_4 = arith.constant 9 : i32
    %11 = vector.broadcast %c9_i32_4 : i32 to vector<18x2xi32>
    %12 = arith.muli %10, %11 : vector<18x2xi32>
    %13 = arith.cmpi slt, %4, %12 : vector<18x2xi32>
    %14 = arith.andi %8, %13 : vector<18x2xi1>
    %15 = arith.extui %14 : vector<18x2xi1> to vector<18x2xi32>
    %16 = arith.sitofp %15 : vector<18x2xi32> to vector<18x2xf32>
    %17 = tpu.iota {dimensions = array<i32: 1>} : vector<2x18xi32>
    %18 = tpu.iota {dimensions = array<i32: 0>} : vector<2x18xi32>
    %c9_i32_5 = arith.constant 9 : i32
    %19 = vector.broadcast %c9_i32_5 : i32 to vector<2x18xi32>
    %20 = arith.muli %18, %19 : vector<2x18xi32>
    %21 = arith.cmpi sge, %17, %20 : vector<2x18xi32>
    %c1_i32_6 = arith.constant 1 : i32
    %22 = vector.broadcast %c1_i32_6 : i32 to vector<2x18xi32>
    %23 = arith.addi %18, %22 : vector<2x18xi32>
    %c9_i32_7 = arith.constant 9 : i32
    %24 = vector.broadcast %c9_i32_7 : i32 to vector<2x18xi32>
    %25 = arith.muli %23, %24 : vector<2x18xi32>
    %26 = arith.cmpi slt, %17, %25 : vector<2x18xi32>
    %27 = arith.andi %21, %26 : vector<2x18xi1>
    %28 = arith.extui %27 : vector<2x18xi1> to vector<2x18xi32>
    %29 = arith.sitofp %28 : vector<2x18xi32> to vector<2x18xf32>
    %cst_8 = arith.constant dense<0.000000e+00> : vector<64x2xf32>
    %30 = tpu.matmul %3, %16, %cst_8 {dimension_numbers = #tpu.dot_dimension_numbers<[1], [0], [0], [1], [0, 0, 1, 1], [], []>} : vector<64x18xf32>, vector<18x2xf32>, vector<64x2xf32> -> vector<64x2xf32>
    %cst_9 = arith.constant 0.111111112 : f32
    %31 = vector.broadcast %cst_9 : f32 to vector<64x2xf32>
    %32 = arith.mulf %30, %31 : vector<64x2xf32>
    %33 = arith.mulf %3, %3 : vector<64x18xf32>
    %cst_10 = arith.constant dense<0.000000e+00> : vector<64x2xf32>
    %34 = tpu.matmul %33, %16, %cst_10 {dimension_numbers = #tpu.dot_dimension_numbers<[1], [0], [0], [1], [0, 0, 1, 1], [], []>} : vector<64x18xf32>, vector<18x2xf32>, vector<64x2xf32> -> vector<64x2xf32>
    %cst_11 = arith.constant 0.111111112 : f32
    %35 = vector.broadcast %cst_11 : f32 to vector<64x2xf32>
    %36 = arith.mulf %34, %35 : vector<64x2xf32>
    %cst_12 = arith.constant dense<0.000000e+00> : vector<64x18xf32>
    %37 = tpu.matmul %32, %29, %cst_12 {dimension_numbers = #tpu.dot_dimension_numbers<[1], [0], [0], [1], [0, 0, 1, 1], [], []>} : vector<64x2xf32>, vector<2x18xf32>, vector<64x18xf32> -> vector<64x18xf32>
    %cst_13 = arith.constant dense<0.000000e+00> : vector<64x18xf32>
    %38 = tpu.matmul %36, %29, %cst_13 {dimension_numbers = #tpu.dot_dimension_numbers<[1], [0], [0], [1], [0, 0, 1, 1], [], []>} : vector<64x2xf32>, vector<2x18xf32>, vector<64x18xf32> -> vector<64x18xf32>
    %39 = arith.mulf %37, %37 : vector<64x18xf32>
    %40 = arith.subf %38, %39 : vector<64x18xf32>
    %cst_14 = arith.constant 0.000000e+00 : f32
    %41 = vector.broadcast %cst_14 : f32 to vector<64x18xf32>
    %42 = arith.maximumf %40, %41 : vector<64x18xf32>
    %43 = arith.subf %3, %37 : vector<64x18xf32>
    %cst_15 = arith.constant 9.99999974E-6 : f32
    %44 = vector.broadcast %cst_15 : f32 to vector<64x18xf32>
    %45 = arith.addf %42, %44 : vector<64x18xf32>
    %46 = math.rsqrt %45 : vector<64x18xf32>
    %47 = arith.mulf %43, %46 : vector<64x18xf32>
    %cst_16 = arith.constant 0.000000e+00 : f32
    %48 = vector.broadcast %cst_16 : f32 to vector<64x18xf32>
    %49 = arith.cmpf oge, %47, %48 : vector<64x18xf32>
    %cst_17 = arith.constant 2.000000e-01 : f32
    %50 = vector.broadcast %cst_17 : f32 to vector<64x18xf32>
    %51 = arith.mulf %50, %47 : vector<64x18xf32>
    %52 = arith.select %49, %47, %51 : vector<64x18xi1>, vector<64x18xf32>
    %53 = arith.truncf %52 : vector<64x18xf32> to vector<64x18xbf16>
    %c0_18 = arith.constant 0 : index
    %c0_19 = arith.constant 0 : index
    %c0_20 = arith.constant 0 : index
    %54 = vector.load %arg3[%c0_18, %c0_19, %c0_20] : memref<1x64x18xbf16, #tpu.memory_space<vmem>>, vector<1x64x18xbf16>
    %55 = vector.shape_cast %54 : vector<1x64x18xbf16> to vector<64x18xbf16>
    %56 = vector.shape_cast %53 : vector<64x18xbf16> to vector<1x64x18xbf16>
    tpu.vector_store %arg3[%c0_18, %c0_19, %c0_20], %56 {strides = array<i32>} : memref<1x64x18xbf16, #tpu.memory_space<vmem>>, vector<1x64x18xbf16>,
    return
  }
  func.func @transform_0(%arg0: i32) -> (i32, i32, i32) {
    %c0_i32 = arith.constant 0 : i32
    %c0_i32_0 = arith.constant 0 : i32
    %c0_i32_1 = arith.constant 0 : i32
    return %arg0, %c0_i32, %c0_i32_0 : i32, i32, i32
  }
  func.func @transform_1(%arg0: i32) -> (i32, i32) {
    %c0_i32 = arith.constant 0 : i32
    %c0_i32_0 = arith.constant 0 : i32
    %c0_i32_1 = arith.constant 0 : i32
    return %c0_i32, %c0_i32_0 : i32, i32
  }
  func.func @transform_2(%arg0: i32) -> (i32, i32, i32) {
    %c0_i32 = arith.constant 0 : i32
    %c0_i32_0 = arith.constant 0 : i32
    %c0_i32_1 = arith.constant 0 : i32
    return %arg0, %c0_i32, %c0_i32_0 : i32, i32, i32
  }
}

module attributes {stable_mosaic.version = 11 : i64} {
  func.func @_conv_block_kernel(%arg0: i32, %arg1: memref<1x1024x8xbf16, #tpu.memory_space<vmem>>, %arg2: memref<1x1024xbf16, #tpu.memory_space<vmem>>, %arg3: memref<1x1xf32, #tpu.memory_space<vmem>>, %arg4: memref<1x1x8xf32, #tpu.memory_space<vmem>>) attributes {dimension_semantics = [#tpu.dimension_semantics<parallel>], iteration_bounds = array<i64: 1>, scalar_prefetch = 0 : i64, scratch_operands = 0 : i64, tpu.core_type = #tpu.core_type<tc>, window_params = [{transform_indices = @transform_0, window_bounds = array<i64: 1, 1024, 8>}, {pipeline_mode = #tpu.pipeline_mode<synchronous>, transform_indices = @transform_1, window_bounds = array<i64: 1, 1024>}, {pipeline_mode = #tpu.pipeline_mode<synchronous>, transform_indices = @transform_2, window_bounds = array<i64: 1, 1>}, {transform_indices = @transform_3, window_bounds = array<i64: 1, 1, 8>}]} {
    %c0 = arith.constant 0 : index
    %c0_0 = arith.constant 0 : index
    %0 = vector.load %arg2[%c0, %c0_0] : memref<1x1024xbf16, #tpu.memory_space<vmem>>, vector<1x1024xbf16>
    %c0_1 = arith.constant 0 : index
    %c0_2 = arith.constant 0 : index
    %c0_3 = arith.constant 0 : index
    %1 = vector.load %arg1[%c0_1, %c0_2, %c0_3] : memref<1x1024x8xbf16, #tpu.memory_space<vmem>>, vector<1x1024x8xbf16>
    %2 = vector.shape_cast %1 : vector<1x1024x8xbf16> to vector<1024x8xbf16>
    %cst = arith.constant dense<0.000000e+00> : vector<1x8xf32>
    %3 = tpu.matmul %0, %2, %cst {dimension_numbers = #tpu.dot_dimension_numbers<[1], [0], [0], [1], [0, 0, 1, 1], [], []>} : vector<1x1024xbf16>, vector<1024x8xbf16>, vector<1x8xf32> -> vector<1x8xf32>
    %c0_4 = arith.constant 0 : index
    %c0_5 = arith.constant 0 : index
    %4 = vector.load %arg3[%c0_4, %c0_5] : memref<1x1xf32, #tpu.memory_space<vmem>>, vector<1x1xf32>
    %5 = vector.broadcast %4 : vector<1x1xf32> to vector<1x8xf32>
    %6 = arith.addf %3, %5 : vector<1x8xf32>
    %7 = arith.negf %6 : vector<1x8xf32>
    %8 = math.exp %7 : vector<1x8xf32>
    %cst_6 = arith.constant 1.000000e+00 : f32
    %9 = vector.broadcast %cst_6 : f32 to vector<1x8xf32>
    %10 = arith.addf %9, %8 : vector<1x8xf32>
    %11 = arith.divf %9, %10 : vector<1x8xf32>
    %c0_7 = arith.constant 0 : index
    %c0_8 = arith.constant 0 : index
    %c0_9 = arith.constant 0 : index
    %12 = vector.load %arg4[%c0_7, %c0_8, %c0_9] : memref<1x1x8xf32, #tpu.memory_space<vmem>>, vector<1x1x8xf32>
    %13 = vector.shape_cast %12 : vector<1x1x8xf32> to vector<1x8xf32>
    %14 = vector.shape_cast %11 : vector<1x8xf32> to vector<1x1x8xf32>
    tpu.vector_store %arg4[%c0_7, %c0_8, %c0_9], %14 {strides = array<i32>} : memref<1x1x8xf32, #tpu.memory_space<vmem>>, vector<1x1x8xf32>,
    return
  }
  func.func @transform_0(%arg0: i32) -> (i32, i32, i32) {
    %c0_i32 = arith.constant 0 : i32
    %c0_i32_0 = arith.constant 0 : i32
    %c0_i32_1 = arith.constant 0 : i32
    return %arg0, %c0_i32, %c0_i32_0 : i32, i32, i32
  }
  func.func @transform_1(%arg0: i32) -> (i32, i32) {
    %c0_i32 = arith.constant 0 : i32
    %c0_i32_0 = arith.constant 0 : i32
    %c0_i32_1 = arith.constant 0 : i32
    return %c0_i32, %c0_i32_0 : i32, i32
  }
  func.func @transform_2(%arg0: i32) -> (i32, i32) {
    %c0_i32 = arith.constant 0 : i32
    %c0_i32_0 = arith.constant 0 : i32
    %c0_i32_1 = arith.constant 0 : i32
    return %c0_i32, %c0_i32_0 : i32, i32
  }
  func.func @transform_3(%arg0: i32) -> (i32, i32, i32) {
    %c0_i32 = arith.constant 0 : i32
    %c0_i32_0 = arith.constant 0 : i32
    %c0_i32_1 = arith.constant 0 : i32
    return %arg0, %c0_i32, %c0_i32_0 : i32, i32, i32
  }
}

</mosaic_0001>

<bundles_post_ra>
// kernel: discriminator_forward.5
= control target key start
LH: loop header
LB: loop body
LE: loop exit
PB: predicated region body
PF: predicated region fallthrough
CT: control target
= control target key end

     0   :  { %s399_s12 = smov 0   ;;  %s426_s0 = inlined_call_operand.vmem [shape: bf16[2,48,256], index: 0, kind: input, shape index: {}]   ;;  %s427_s1 = inlined_call_operand.vmem [shape: bf16[8,48], index: 1, kind: input, shape index: {}]   ;;  %s428_s2 = inlined_call_operand.vmem [shape: f32[8,1], index: 2, kind: input, shape index: {}]   ;;  %s429_s3 = inlined_call_operand.vmem [shape: bf16[2,8,256], index: 3, kind: output, shape index: {}]  }
   0x1 LB: > { %s330_s13 = sadd.s32 4294967295, %s376_s12   ;;  %p334_p0 = scmp.ge.s32.totalorder %s376_s12, 1  ;;  %s376_s12 = sphi %s399_s12, %s13_s12  }
   0x2   : > { %p137_p1 = scmp.lt.s32.totalorder %s376_s12, 3 }
   0x4   : > { %p138_p2 = pnand %p334_p0, %p137_p1 }
   0x5   : > { %p161_p3 = scmp.lt.s32.totalorder (!%p138_p2), %s330_s13, 1  ;;  %v179_v0 = vld [vmem:[%s428_s2] sm:$0xff] (!%p138_p2)  ;;  %v378_v1 = vmov (!%p138_p2), 0   ;;  %vm215_vm0 = vcmask (!%p138_p2), 392192  }
   0x6   : > { %141 = sbr.rel (%p138_p2) target bundleno = 251 (0xfb), region = 32  ;;  %251 = vmatprep.mubr.bf16.mxu0 (!%p138_p2), %v378_v1  ;;  %360 = vset.pattern.permute.xlu0 (!%p138_p2), %v378_v1  ;;  %v172_v8 = vld [vmem:[%s427_s1] sm:$0xf] (!%p138_p2) }
   0x7   : > { %182 = vperm.xlu0 (!%p138_p2), %360, %v179_v0  }
   0xd   : > { %s431_s13 = smov (!%p161_p3, %s330_s13), 1 }
   0xe   : > { %s350_s16 = smul.u32 48, %s431_s13  ;;  %s348_s22 = sshll.u32 %s431_s13, 3 }
   0xf   : > { %s170_s25 = scalar_lea.vmem %s429_s3, %s348_s22 }
  0x10   : > { %s165_s19 = scalar_lea.vmem %s426_s0, %s350_s16 }
  0x11   : > { %v361_v2 = vld [vmem:[%s165_s19 + $0x4] ss:$8 sps:$4 sm:$0xff]   ;;  %v363_v3 = vld [vmem:[%s165_s19] ss:$8 sps:$4 sm:$0xff]   ;;  %v364_v4 = vld [vmem:[%s165_s19 + $0x14] ss:$8 sps:$4 sm:$0xff]  }
  0x12   : > { %219 = vmatprep.subr.bf16.mxu0 %v361_v2  ;;  %v366_v5 = vld [vmem:[%s165_s19 + $0x10] ss:$8 sps:$4 sm:$0xff]   ;;  %v367_v6 = vld [vmem:[%s165_s19 + $0x24] ss:$8 sps:$4 sm:$0xff]   ;;  %v369_v7 = vld [vmem:[%s165_s19 + $0x20] ss:$8 sps:$4 sm:$0xff]  }
  0x13   : > { %220 = vmatpush1.bf16.msra.mxu0 %v363_v3 }
  0x14   : > { %221 = vmatprep.subr.bf16.mxu0 %v364_v4 }
  0x17   : > { %222 = vmatpush1.bf16.msra.mxu0 %v366_v5 }
  0x18   : > { %223 = vmatprep.subr.bf16.mxu0 %v367_v6 }
  0x1b   : > { %224 = vmatpush1.bf16.msra.mxu0 %v369_v7 }
  0x1e   : > { %344 = vmatmul.mubr.msk.bf16.vlgmr.msra.gmra.mrb[0].mxu0 %vm215_vm0, %v172_v8 }
  0x86   : > { %v183_v9 = vpop.permute.xlu0 %182 }
  0xf1   : > { %v253_v10 = vpop.f32.mrb[0].mxu0 }
  0xf2   : > { %v254_v11 = vadd.f32 %v253_v10, %v183_v9  ;;  %v255_v12 = vpop.f32.mrb[1].mxu0 }
  0xf3   : > { %v256_v13 = vadd.f32 %v255_v12, %v183_v9  ;;  %v257_v14 = vpop.f32.mrb[2].mxu0 }
  0xf4   : > { %vm260_vm1 = vcmp.ge.f32.partialorder %v254_v11, 0.0  ;;  %v262_v15 = vmul.f32 0.2, %v254_v11  ;;  %v258_v16 = vpop.f32.mrb[3].mxu0 }
  0xf5   : > { %vm261_vm2 = vcmp.ge.f32.partialorder %v256_v13, 0.0  ;;  %v263_v17 = vmul.f32 0.2, %v256_v13 }
  0xf6   : > { %v264_v18 = vsel %vm260_vm1, %v254_v11, %v262_v15 }
  0xf7   : > { %v265_v19 = vsel %vm261_vm2, %v256_v13, %v263_v17 }
  0xf8   : > { %v349_v20 = vpack.c.bf16 %v265_v19, %v264_v18 }
  0xfa   : > { %274 = vst [vmem:[%s170_s25] sm:$0xff] %v349_v20 }
  0xfb PF: > { %s13_s12 = sadd.s32 1, %s376_s12  }
  0xfc   : > { %p10_p4 = scmp.ge.s32.totalorder %s13_s12, 4  }
  0xfe   :  { %12 = sbr.rel (!%p10_p4) target bundleno = 1 (0x1), region = 62 }

// kernel: discriminator_forward.6
= control target key start
LH: loop header
LB: loop body
LE: loop exit
PB: predicated region body
PF: predicated region fallthrough
CT: control target
= control target key end

     0   :  { %v125_v0 = vlaneseq  ;;  %v896_v1 = vmov 0.0   ;;  %vm897_vm0 = vmmov 0   ;;  %v898_v18 = vmov 1.0|1.0   ;;  %s1145_s0 = inlined_call_operand.vmem [shape: bf16[1,128,128], index: 0, kind: input, shape index: {}]   ;;  %s1146_s1 = inlined_call_operand.vmem [shape: bf16[16,128], index: 1, kind: input, shape index: {}]   ;;  %s1147_s2 = inlined_call_operand.vmem [shape: bf16[1,16,128], index: 2, kind: output, shape index: {}]  }
   0x1   :  { %716 = vmatprep.subr.bf16.mxu0 %v896_v1  ;;  %v883_v2 = vld [vmem:[%s1145_s0] sm:$0xff]   ;;  %732 = vmatprep.mubr.msk.bf16.mxu0 %vm897_vm0, %v896_v1  ;;  %v884_v4 = vld [vmem:[%s1145_s0 + $0x8] sm:$0xff]   ;;  %v885_v9 = vld [vmem:[%s1145_s0 + $0x10] sm:$0xff]  }
   0x2   :  { %v919_v3 = vshrl.u32 %v125_v0, 7  ;;  %717 = vmatpush3.bf16.msra.mxu0 %v883_v2  ;;  %v924_v5 = vand.u32 127, %v125_v0  ;;  %v886_v14 = vld [vmem:[%s1145_s0 + $0x18] sm:$0xff]   ;;  %v887_v20 = vld [vmem:[%s1145_s0 + $0x20] sm:$0xff]   ;;  %v888_v24 = vld [vmem:[%s1145_s0 + $0x28] sm:$0xff]  }
   0x3   :  { %718 = vmatprep.subr.bf16.mxu0 %v896_v1  ;;  %v889_v30 = vld [vmem:[%s1145_s0 + $0x30] sm:$0xff]   ;;  %v890_v34 = vld [vmem:[%s1145_s0 + $0x38] sm:$0xff]   ;;  %v891_v37 = vld [vmem:[%s1146_s1] sm:$0xff]  }
   0x4   :  { %v127_v6 = vadd.s32 8, %v919_v3  ;;  %v929_v7 = vmul.u32 64, %v924_v5  ;;  %v161_v8 = vadd.s32 1, %v924_v5  ;;  %v128_v10 = vadd.s32 16, %v919_v3 }
   0x5   :  { %v129_v12 = vadd.s32 24, %v919_v3  ;;  %v130_v13 = vadd.s32 32, %v919_v3  ;;  %v131_v15 = vadd.s32 40, %v919_v3  ;;  %v132_v17 = vadd.s32 48, %v919_v3 }
   0x6   :  { %719 = vmatpush3.bf16.msra.mxu0 %v884_v4  ;;  %vm145_vm1 = vcmp.ge.s32.totalorder %v919_v3, %v929_v7  ;;  %v939_v11 = vmul.u32 64, %v161_v8  ;;  %vm146_vm2 = vcmp.ge.s32.totalorder %v127_v6, %v929_v7  ;;  %vm147_vm6 = vcmp.ge.s32.totalorder %v128_v10, %v929_v7 }
   0x7   :  { %720 = vmatprep.subr.bf16.mxu0 %v896_v1  ;;  %vm148_vm9 = vcmp.ge.s32.totalorder %v129_v12, %v929_v7  ;;  %vm149_vm13 = vcmp.ge.s32.totalorder %v130_v13, %v929_v7  ;;  %v133_v19 = vadd.s32 56, %v919_v3  ;;  %vm150_vm0 = vcmp.ge.s32.totalorder %v131_v15, %v929_v7 }
   0x8   :  { %vm163_vm3 = vcmp.lt.s32.totalorder %v919_v3, %v939_v11  ;;  %vm164_vm4 = vcmp.lt.s32.totalorder %v127_v6, %v939_v11  ;;  %vm165_vm7 = vcmp.lt.s32.totalorder %v128_v10, %v939_v11  ;;  %vm166_vm10 = vcmp.lt.s32.totalorder %v129_v12, %v939_v11 }
   0x9   :  { %vm179_vm5 = vmand %vm145_vm1, %vm163_vm3  ;;  %vm167_vm14 = vcmp.lt.s32.totalorder %v130_v13, %v939_v11  ;;  %vm168_vm1 = vcmp.lt.s32.totalorder %v131_v15, %v939_v11  ;;  %v134_v22 = vadd.s32 64, %v919_v3  ;;  %v135_v23 = vadd.s32 72, %v919_v3 }
   0xa   :  { %721 = vmatpush3.bf16.msra.mxu0 %v885_v9  ;;  %vm180_vm8 = vmand %vm146_vm2, %vm164_vm4  ;;  %vm151_vm4 = vcmp.ge.s32.totalorder %v132_v17, %v929_v7  ;;  %v136_v26 = vadd.s32 80, %v919_v3  ;;  %v137_v27 = vadd.s32 88, %v919_v3  ;;  %v138_v29 = vadd.s32 96, %v919_v3 }
   0xb   :  { %722 = vmatprep.subr.bf16.mxu0 %v896_v1  ;;  %vm956_vm11 = vmpackc.low %vm180_vm8, %vm179_vm5  ;;  %vm169_vm5 = vcmp.lt.s32.totalorder %v132_v17, %v939_v11  ;;  %vm170_vm8 = vcmp.lt.s32.totalorder %v133_v19, %v939_v11  ;;  %v139_v31 = vadd.s32 104, %v919_v3  ;;  %v140_v33 = vadd.s32 112, %v919_v3 }
   0xc   :  { %817 = vmatprep.subr.msk.bf16.mxu1 %vm956_vm11, %v898_v18  ;;  %vm181_vm12 = vmand %vm147_vm6, %vm165_vm7  ;;  %vm152_vm7 = vcmp.ge.s32.totalorder %v133_v19, %v929_v7  ;;  %v141_v35 = vadd.s32 120, %v919_v3  ;;  %v229_v46 = vadd.s32 1, %v919_v3  ;;  %v227_v47 = vmul.u32 64, %v919_v3 }
   0xd   :  { %819 = vmatpush3.bf16.msk.msra.mxu1 %vm956_vm11, %v898_v18  ;;  %vm182_vm15 = vmand %vm148_vm9, %vm166_vm10 }
   0xe   :  { %723 = vmatpush3.bf16.msra.mxu0 %v886_v14  ;;  %vm976_vm2 = vmpackc.low %vm182_vm15, %vm181_vm12  ;;  %vm153_vm12 = vcmp.ge.s32.totalorder %v134_v22, %v929_v7  ;;  %vm154_vm15 = vcmp.ge.s32.totalorder %v135_v23, %v929_v7  ;;  %v230_v48 = vmul.u32 64, %v229_v46 }
   0xf   :  { %724 = vmatprep.subr.bf16.mxu0 %v896_v1  ;;  %821 = vmatprep.subr.msk.bf16.mxu1 %vm976_vm2, %v898_v18  ;;  %vm183_vm3 = vmand %vm149_vm13, %vm167_vm14  ;;  %vm171_vm13 = vcmp.lt.s32.totalorder %v134_v22, %v939_v11 }
  0x10   :  { %vm184_vm6 = vmand %vm150_vm0, %vm168_vm1  ;;  %vm172_vm0 = vcmp.lt.s32.totalorder %v135_v23, %v939_v11 }
  0x11   :  { %823 = vmatpush3.bf16.msk.msra.mxu1 %vm976_vm2, %v898_v18  ;;  %vm995_vm9 = vmpackc.low %vm184_vm6, %vm183_vm3 }
  0x12   :  { %725 = vmatpush3.bf16.msra.mxu0 %v887_v20  ;;  %825 = vmatprep.subr.msk.bf16.mxu1 %vm995_vm9, %v898_v18  ;;  %vm185_vm10 = vmand %vm151_vm4, %vm169_vm5  ;;  %vm155_vm4 = vcmp.ge.s32.totalorder %v136_v26, %v929_v7  ;;  %vm173_vm5 = vcmp.lt.s32.totalorder %v136_v26, %v939_v11 }
  0x13   :  { %726 = vmatprep.subr.bf16.mxu0 %v896_v1  ;;  %vm186_vm14 = vmand %vm152_vm7, %vm170_vm8  ;;  %vm156_vm7 = vcmp.ge.s32.totalorder %v137_v27, %v929_v7  ;;  %vm174_vm8 = vcmp.lt.s32.totalorder %v137_v27, %v939_v11 }
  0x14   :  { %vm1009_vm1 = vmpackc.low %vm186_vm14, %vm185_vm10  ;;  %vm175_vm14 = vcmp.lt.s32.totalorder %v138_v29, %v939_v11 }
  0x15   :  { %827 = vmatpush3.bf16.msk.msra.mxu1 %vm995_vm9, %v898_v18  ;;  %vm187_vm3 = vmand %vm153_vm12, %vm171_vm13  ;;  %vm157_vm13 = vcmp.ge.s32.totalorder %v138_v29, %v929_v7 }
  0x16   :  { %727 = vmatpush3.bf16.msra.mxu0 %v888_v24  ;;  %829 = vmatprep.subr.msk.bf16.mxu1 %vm1009_vm1, %v898_v18  ;;  %vm188_vm6 = vmand %vm154_vm15, %vm172_vm0  ;;  %vm158_vm0 = vcmp.ge.s32.totalorder %v139_v31, %v929_v7 }
  0x17   :  { %728 = vmatprep.subr.bf16.mxu0 %v896_v1  ;;  %vm1029_vm10 = vmpackc.low %vm188_vm6, %vm187_vm3  ;;  %vm176_vm3 = vcmp.lt.s32.totalorder %v139_v31, %v939_v11 }
  0x18   :  { %vm189_vm12 = vmand %vm155_vm4, %vm173_vm5 }
  0x19   :  { %831 = vmatpush3.bf16.msk.msra.mxu1 %vm1009_vm1, %v898_v18  ;;  %vm190_vm15 = vmand %vm156_vm7, %vm174_vm8  ;;  %vm159_vm7 = vcmp.ge.s32.totalorder %v140_v33, %v929_v7  ;;  %vm177_vm8 = vcmp.lt.s32.totalorder %v140_v33, %v939_v11 }
  0x1a   :  { %729 = vmatpush3.bf16.msra.mxu0 %v889_v30  ;;  %833 = vmatprep.subr.msk.bf16.mxu1 %vm1029_vm10, %v898_v18  ;;  %vm1049_vm4 = vmpackc.low %vm190_vm15, %vm189_vm12  ;;  %vm160_vm12 = vcmp.ge.s32.totalorder %v141_v35, %v929_v7  ;;  %vm178_vm15 = vcmp.lt.s32.totalorder %v141_v35, %v939_v11 }
  0x1b   :  { %730 = vmatprep.subr.bf16.mxu0 %v896_v1  ;;  %vm191_vm5 = vmand %vm157_vm13, %vm175_vm14 }
  0x1c   :  { %vm192_vm6 = vmand %vm158_vm0, %vm176_vm3 }
  0x1d   :  { %835 = vmatpush3.bf16.msk.msra.mxu1 %vm1029_vm10, %v898_v18  ;;  %vm1069_vm13 = vmpackc.low %vm192_vm6, %vm191_vm5 }
  0x1e   :  { %731 = vmatpush3.bf16.msra.mxu0 %v890_v34  ;;  %837 = vmatprep.subr.msk.bf16.mxu1 %vm1049_vm4, %v898_v18  ;;  %vm193_vm14 = vmand %vm159_vm7, %vm177_vm8 }
  0x1f   :  { %849 = vmatprep.subr.msk.bf16.mxu0 %vm956_vm11, %v898_v18  ;;  %vm194_vm0 = vmand %vm160_vm12, %vm178_vm15 }
  0x20   :  { %vm1085_vm3 = vmpackc.low %vm194_vm0, %vm193_vm14 }
  0x21   :  { %733 = vmatmul.mubr.bf16.vlgmr.msra.gmra.mrb[0].mxu0 %v891_v37  ;;  %839 = vmatpush3.bf16.msk.msra.mxu1 %vm1049_vm4, %v898_v18 }
  0x22   :  { %851 = vmatpush3.bf16.msk.msra.mxu0 %vm956_vm11, %v898_v18  ;;  %841 = vmatprep.subr.msk.bf16.mxu1 %vm1069_vm13, %v898_v18  ;;  %vm228_vm11 = vcmp.ge.s32.totalorder %v924_v5, %v227_v47 }
  0x23   :  { %853 = vmatprep.subr.msk.bf16.mxu0 %vm976_vm2, %v898_v18 }
  0x25   :  { %843 = vmatpush3.bf16.msk.msra.mxu1 %vm1069_vm13, %v898_v18 }
  0x26   :  { %855 = vmatpush3.bf16.msk.msra.mxu0 %vm976_vm2, %v898_v18  ;;  %845 = vmatprep.subr.msk.bf16.mxu1 %vm1085_vm3, %v898_v18  ;;  %vm231_vm2 = vcmp.lt.s32.totalorder %v924_v5, %v230_v48 }
  0x27   :  { %857 = vmatprep.subr.msk.bf16.mxu0 %vm995_vm9, %v898_v18 }
  0x29   :  { %847 = vmatpush3.bf16.msk.msra.mxu1 %vm1085_vm3, %v898_v18 }
  0x2a   :  { %859 = vmatpush3.bf16.msk.msra.mxu0 %vm995_vm9, %v898_v18  ;;  %vm232_vm9 = vmand %vm228_vm11, %vm231_vm2 }
  0x2b   :  { %861 = vmatprep.subr.msk.bf16.mxu0 %vm1009_vm1, %v898_v18  ;;  %v617_v49 = vsel %vm232_vm9, 1.0, %v896_v1 }
  0x2e   :  { %863 = vmatpush3.bf16.msk.msra.mxu0 %vm1009_vm1, %v898_v18  ;;  %vm398_vm1 = vcmask 1041408  }
  0x2f   :  { %865 = vmatprep.subr.msk.bf16.mxu0 %vm1029_vm10, %v898_v18  ;;  %806 = vmatprep.subr.msk.mxu1 %vm398_vm1, %v617_v49 }
  0x32   :  { %867 = vmatpush3.bf16.msk.msra.mxu0 %vm1029_vm10, %v898_v18  ;;  %vm391_vm10 = vcmask 15360  }
  0x33   :  { %869 = vmatprep.subr.msk.bf16.mxu0 %vm1049_vm4, %v898_v18 }
  0x36   :  { %871 = vmatpush3.bf16.msk.msra.mxu0 %vm1049_vm4, %v898_v18 }
  0x37   :  { %873 = vmatprep.subr.msk.bf16.mxu0 %vm1069_vm13, %v898_v18 }
  0x3a   :  { %875 = vmatpush3.bf16.msk.msra.mxu0 %vm1069_vm13, %v898_v18 }
  0x3b   :  { %877 = vmatprep.subr.msk.bf16.mxu0 %vm1085_vm3, %v898_v18 }
  0x3e   :  { %879 = vmatpush3.bf16.msk.msra.mxu0 %vm1085_vm3, %v898_v18 }
  0xf4   :  { %v118_v40 = vpop.f32.mrb[0].mxu0 }
  0xf5   :  { %v312_v41 = vmul.f32 %v118_v40, %v118_v40  ;;  %v734_v42 = vpop.f32.mrb[1].mxu0  ;;  %768 = vmatprep.mubr.f32.mxu1 %v118_v40 }
  0xf6   :  { %v121_v43 = vpop.f32.mrb[2].mxu0 }
  0xf7   :  { %v313_v44 = vmul.f32 %v121_v43, %v121_v43  ;;  %v735_v45 = vpop.f32.mrb[3].mxu0  ;;  %769 = vmatmul.mubr.f32.vlgmr.msra.gmra.mrb[0].mxu1 %v121_v43  ;;  %803 = vmatprep.mubr.f32.mxu0 %v312_v41 }
  0xf8   :  { %807 = vmatpush3.msk.msra.mxu1 %vm398_vm1, %v617_v49 }
  0xf9   :  { %804 = vmatmul.mubr.f32.vlgmr.msra.gmra.mrb[4].mxu0 %v313_v44  ;;  %811 = vmatprep.subr.msk.mxu1 %vm398_vm1, %v617_v49 }
 0x1ca   :  { %v770_v50 = vpop.f32.mrb[0].mxu1 }
 0x1cb   :  { %v301_v51 = vpop.f32.mrb[1].mxu1  ;;  %v311_v54 = vmul.f32 0.015625, %v770_v50 }
 0x1cc   :  { %v310_v52 = vmul.f32 0.015625, %v301_v51  ;;  %v805_v53 = vpop.f32.mrb[4].mxu0 }
 0x1cd   :  { %v380_v55 = vpop.f32.mrb[5].mxu0  ;;  %v390_v57 = vmul.f32 0.015625, %v805_v53 }
 0x1ce   :  { %v389_v56 = vmul.f32 0.015625, %v380_v55  ;;  %808 = vmatprep.mubr.msk.f32.mxu1 %vm391_vm10, %v310_v52 }
 0x1cf   :  { %809 = vmatmul.mubr.msk.f32.vlgmr.msra.gmra.mrb[2].mxu1 %vm391_vm10, %v311_v54 }
 0x1d0   :  { %812 = vmatpush3.msk.msra.mxu1 %vm398_vm1, %v617_v49  ;;  %813 = vmatprep.mubr.msk.f32.mxu1 %vm391_vm10, %v389_v56 }
 0x1d3   :  { %814 = vmatmul.mubr.msk.f32.vlgmr.msra.gmra.mrb[4].mxu1 %vm391_vm10, %v390_v57 }
 0x2a2   :  { %v810_v58 = vpop.f32.mrb[2].mxu1 }
 0x2a3   :  { %v565_v59 = vsub.f32 %v121_v43, %v810_v58  ;;  %v468_v60 = vpop.f32.mrb[3].mxu1  ;;  %v559_v62 = vmul.f32 %v810_v58, %v810_v58 }
 0x2a4   :  { %v564_v61 = vsub.f32 %v118_v40, %v468_v60  ;;  %v558_v63 = vmul.f32 %v468_v60, %v468_v60 }
 0x2a6   :  { %v815_v0 = vpop.f32.mrb[4].mxu1 }
 0x2a7   :  { %v561_v1 = vsub.f32 %v815_v0, %v559_v62  ;;  %v549_v2 = vpop.f32.mrb[5].mxu1 }
 0x2a8   :  { %v560_v3 = vsub.f32 %v549_v2, %v558_v63 }
 0x2a9   :  { %v563_v4 = vmax.f32 %v561_v1, 0.0 }
 0x2aa   :  { %v562_v5 = vmax.f32 %v560_v3, 0.0 }
 0x2ab   :  { %v567_v6 = vadd.f32 1e-05, %v563_v4 }
 0x2ac   :  { %v566_v7 = vadd.f32 1e-05, %v562_v5 }
 0x2ad   :  { %892 = vrsqrt.f32 %v567_v6 }
 0x2ae   :  { %894 = vrsqrt.f32 %v566_v7 }
 0x2b7   :  { %v893_v8 = vpop.eup %892 }
 0x2b8   :  { %v895_v9 = vpop.eup %894  ;;  %v571_v10 = vmul.f32 %v893_v8, %v565_v59 }
 0x2b9   :  { %v570_v11 = vmul.f32 %v895_v9, %v564_v61 }
 0x2ba   :  { %vm573_vm4 = vcmp.ge.f32.partialorder %v571_v10, 0.0  ;;  %v575_v12 = vmul.f32 0.2, %v571_v10 }
 0x2bb   :  { %vm572_vm5 = vcmp.ge.f32.partialorder %v570_v11, 0.0  ;;  %v574_v13 = vmul.f32 0.2, %v570_v11 }
 0x2bc   :  { %v577_v14 = vsel %vm573_vm4, %v571_v10, %v575_v12 }
 0x2bd   :  { %v576_v15 = vsel %vm572_vm5, %v570_v11, %v574_v13 }
 0x2be   :  { %v663_v16 = vpack.c.bf16 %v577_v14, %v576_v15 }
 0x2c0   :  { %664 = vst [vmem:[%s1147_s2] sm:$0xff] %v663_v16  }

// kernel: discriminator_forward.7
= control target key start
LH: loop header
LB: loop body
LE: loop exit
PB: predicated region body
PF: predicated region fallthrough
CT: control target
= control target key end

     0   :  { %v213_v0 = vlaneseq  ;;  %v927_v22 = vmov 1.0|1.0   ;;  %vm251_vm14 = vcmask 261120   ;;  %v928_v51 = vmov 0.0   ;;  %s1099_s0 = inlined_call_operand.vmem [shape: bf16[1,256,32], index: 0, kind: input, shape index: {}]   ;;  %s1100_s1 = inlined_call_operand.vmem [shape: bf16[32,256], index: 1, kind: input, shape index: {}]   ;;  %s1101_s2 = inlined_call_operand.vmem [shape: bf16[1,32,32], index: 2, kind: output, shape index: {}]  }
   0x1   :  { %v897_v1 = vld [vmem:[%s1099_s0 + $0x40] sm:$0xff]   ;;  %v899_v3 = vld [vmem:[%s1099_s0 + $0x48] sm:$0xff]   ;;  %v901_v6 = vld [vmem:[%s1099_s0 + $0x50] sm:$0xff]  }
   0x2   :  { %v898_v2 = vld [vmem:[%s1099_s0] sm:$0xff]   ;;  %781 = vmatprep.subr.bf16.mxu0 %v897_v1  ;;  %v900_v4 = vld [vmem:[%s1099_s0 + $0x8] sm:$0xff]   ;;  %v956_v5 = vand.u32 127, %v213_v0  ;;  %v902_v7 = vld [vmem:[%s1099_s0 + $0x10] sm:$0xff]   ;;  %v968_v10 = vshrl.u32 %v213_v0, 7 }
   0x3   :  { %782 = vmatpush3.bf16.msra.mxu0 %v898_v2  ;;  %v903_v9 = vld [vmem:[%s1099_s0 + $0x58] sm:$0xff]   ;;  %v905_v14 = vld [vmem:[%s1099_s0 + $0x60] sm:$0xff]   ;;  %v907_v17 = vld [vmem:[%s1099_s0 + $0x68] sm:$0xff]  }
   0x4   :  { %783 = vmatprep.subr.bf16.mxu0 %v899_v3  ;;  %v225_v8 = vadd.s32 1, %v956_v5  ;;  %v220_v11 = vmul.u32 16, %v956_v5  ;;  %v904_v12 = vld [vmem:[%s1099_s0 + $0x18] sm:$0xff]   ;;  %v215_v15 = vadd.s32 8, %v968_v10  ;;  %v906_v16 = vld [vmem:[%s1099_s0 + $0x20] sm:$0xff]   ;;  %v908_v19 = vld [vmem:[%s1099_s0 + $0x28] sm:$0xff]  }
   0x5   :  { %v915_v18 = vld [vmem:[%s1100_s1 + $0x4] ss:$8 sps:$4 sm:$0xff]   ;;  %v909_v20 = vld [vmem:[%s1099_s0 + $0x70] sm:$0xff]   ;;  %v911_v24 = vld [vmem:[%s1099_s0 + $0x78] sm:$0xff]   ;;  %v216_v29 = vadd.s32 16, %v968_v10  ;;  %v217_v30 = vadd.s32 24, %v968_v10 }
   0x6   :  { %v226_v13 = vmul.u32 16, %v225_v8  ;;  %vm221_vm0 = vcmp.ge.s32.totalorder %v968_v10, %v220_v11  ;;  %vm222_vm2 = vcmp.ge.s32.totalorder %v215_v15, %v220_v11  ;;  %196 = vmatprep.mubr.bf16.mxu0 %v915_v18  ;;  %v910_v23 = vld [vmem:[%s1099_s0 + $0x30] sm:$0xff]   ;;  %v912_v25 = vld [vmem:[%s1099_s0 + $0x38] sm:$0xff]   ;;  %v913_v26 = vld [vmem:[%s1100_s1] ss:$8 sps:$4 sm:$0xff]   ;;  %v245_v48 = vadd.s32 1, %v968_v10 }
   0x7   :  { %784 = vmatpush3.bf16.msra.mxu0 %v900_v4  ;;  %v916_v27 = vld [vmem:[%s1100_s1 + $0x14] ss:$8 sps:$4 sm:$0xff]   ;;  %v918_v28 = vld [vmem:[%s1100_s1 + $0x10] ss:$8 sps:$4 sm:$0xff]   ;;  %vm223_vm7 = vcmp.ge.s32.totalorder %v216_v29, %v220_v11  ;;  %vm224_vm8 = vcmp.ge.s32.totalorder %v217_v30, %v220_v11  ;;  %v243_v49 = vmul.u32 16, %v968_v10 }
   0x8   :  { %785 = vmatprep.subr.bf16.mxu0 %v901_v6  ;;  %vm227_vm1 = vcmp.lt.s32.totalorder %v968_v10, %v226_v13  ;;  %vm228_vm3 = vcmp.lt.s32.totalorder %v215_v15, %v226_v13  ;;  %vm229_vm9 = vcmp.lt.s32.totalorder %v216_v29, %v226_v13  ;;  %vm230_vm10 = vcmp.lt.s32.totalorder %v217_v30, %v226_v13 }
   0x9   :  { %vm231_vm4 = vmand %vm221_vm0, %vm227_vm1  ;;  %v246_v50 = vmul.u32 16, %v245_v48  ;;  %vm244_vm15 = vcmp.ge.s32.totalorder %v956_v5, %v243_v49 }
   0xa   :  { %vm232_vm5 = vmand %vm222_vm2, %vm228_vm3  ;;  %vm471_vm2 = vcmask 1041408   ;;  %vm458_vm3 = vcmask 15360  }
   0xb   :  { %786 = vmatpush3.bf16.msra.mxu0 %v902_v7  ;;  %vm995_vm6 = vmpackc.low %vm232_vm5, %vm231_vm4  ;;  %vm247_vm0 = vcmp.lt.s32.totalorder %v956_v5, %v246_v50 }
   0xc   :  { %787 = vmatprep.subr.bf16.mxu0 %v903_v9  ;;  %880 = vmatprep.subr.msk.bf16.mxu1 %vm995_vm6, %v927_v22  ;;  %vm233_vm11 = vmand %vm223_vm7, %vm229_vm9 }
   0xd   :  { %882 = vmatpush3.bf16.msk.msra.mxu1 %vm995_vm6, %v927_v22  ;;  %vm234_vm12 = vmand %vm224_vm8, %vm230_vm10 }
   0xe   :  { %vm1023_vm13 = vmpackc.low %vm234_vm12, %vm233_vm11 }
   0xf   :  { %788 = vmatpush3.bf16.msra.mxu0 %v904_v12  ;;  %884 = vmatprep.subr.msk.bf16.mxu1 %vm1023_vm13, %v927_v22  ;;  %vm248_vm1 = vmand %vm244_vm15, %vm247_vm0 }
  0x10   :  { %789 = vmatprep.subr.bf16.mxu0 %v905_v14  ;;  %v746_v52 = vsel %vm248_vm1, 1.0, %v928_v51 }
  0x11   :  { %886 = vmatpush3.bf16.msk.msra.mxu1 %vm1023_vm13, %v927_v22 }
  0x12   :  { %888 = vmatprep.subr.msk.bf16.mxu1 %vm995_vm6, %v927_v22 }
  0x13   :  { %790 = vmatpush3.bf16.msra.mxu0 %v906_v16 }
  0x14   :  { %791 = vmatprep.subr.bf16.mxu0 %v907_v17 }
  0x17   :  { %792 = vmatpush3.bf16.msra.mxu0 %v908_v19 }
  0x18   :  { %793 = vmatprep.subr.bf16.mxu0 %v909_v20 }
  0x1b   :  { %794 = vmatpush3.bf16.msra.mxu0 %v910_v23 }
  0x1c   :  { %795 = vmatprep.subr.bf16.mxu0 %v911_v24 }
  0x1f   :  { %796 = vmatpush3.bf16.msra.mxu0 %v912_v25 }
  0x22   :  { %197 = vmatmul.mubr.bf16.vlgmr.msra.gmra.mrb[0].mxu0 %v913_v26 }
  0x23   :  { %204 = vmatprep.mubr.bf16.mxu0 %v916_v27 }
  0x2a   :  { %205 = vmatmul.mubr.bf16.gmra.mrb[4].mxu0 %v918_v28 }
  0xf5   :  { %v797_v32 = vpop.f32.mrb[0].mxu0 }
  0xf6   :  { %v798_v33 = vpop.f32.mrb[1].mxu0 }
  0xf7   :  { %v1033_v34 = vadd.f32 %v798_v33, %v797_v32  ;;  %v800_v35 = vpop.f32.mrb[2].mxu0 }
  0xf8   :  { %v801_v36 = vpop.f32.mrb[3].mxu0 }
  0xf9   :  { %v1035_v37 = vadd.f32 %v801_v36, %v800_v35  ;;  %843 = vmatprep.mubr.msk.f32.mxu1 %vm251_vm14, %v1033_v34  ;;  %v353_v44 = vmul.f32 %v1033_v34, %v1033_v34 }
  0xfb   :  { %844 = vmatmul.mubr.msk.f32.vlgmr.msra.gmra.mrb[0].mxu1 %vm251_vm14, %v1035_v37  ;;  %v354_v45 = vmul.f32 %v1035_v37, %v1035_v37 }
  0xfc   :  { %890 = vmatpush3.bf16.msk.msra.mxu1 %vm995_vm6, %v927_v22  ;;  %vm713_vm6 = vcmask 257024  }
  0xfd   :  { %v803_v38 = vpop.f32.mrb[4].mxu0  ;;  %892 = vmatprep.subr.msk.bf16.mxu1 %vm1023_vm13, %v927_v22 }
  0xfe   :  { %v804_v39 = vpop.f32.mrb[5].mxu0 }
  0xff   :  { %v1045_v40 = vadd.f32 %v804_v39, %v803_v38  ;;  %v806_v41 = vpop.f32.mrb[6].mxu0 }
 0x100   :  { %v807_v42 = vpop.f32.mrb[7].mxu0  ;;  %894 = vmatpush3.bf16.msk.msra.mxu1 %vm1023_vm13, %v927_v22 }
 0x101   :  { %v1049_v43 = vadd.f32 %v807_v42, %v806_v41  ;;  %846 = vmatprep.mubr.msk.f32.mxu1 %vm251_vm14, %v1045_v40  ;;  %v355_v46 = vmul.f32 %v1045_v40, %v1045_v40  ;;  %863 = vmatprep.subr.msk.mxu1 %vm471_vm2, %v746_v52 }
 0x103   :  { %847 = vmatmul.mubr.msk.f32.gmra.mrb[2].mxu1 %vm251_vm14, %v1049_v43  ;;  %v356_v47 = vmul.f32 %v1049_v43, %v1049_v43 }
 0x104   :  { %857 = vmatprep.mubr.msk.f32.mxu1 %vm251_vm14, %v353_v44 }
 0x107   :  { %858 = vmatmul.mubr.msk.f32.vlgmr.msra.gmra.mrb[4].mxu1 %vm251_vm14, %v354_v45 }
 0x108   :  { %860 = vmatprep.mubr.msk.f32.mxu1 %vm251_vm14, %v355_v46  ;;  %864 = vmatpush3.msk.msra.mxu1 %vm471_vm2, %v746_v52 }
 0x109   :  { %871 = vmatprep.subr.msk.mxu1 %vm471_vm2, %v746_v52 }
 0x10b   :  { %861 = vmatmul.mubr.msk.f32.gmra.mrb[6].mxu1 %vm251_vm14, %v356_v47 }
 0x1ce   :  { %v845_v53 = vpop.f32.mrb[0].mxu1 }
 0x1cf   :  { %v330_v54 = vpop.f32.mrb[1].mxu1  ;;  %v350_v56 = vmul.f32 0.0625, %v845_v53 }
 0x1d0   :  { %v349_v55 = vmul.f32 0.0625, %v330_v54 }
 0x1d2   :  { %865 = vmatprep.mubr.msk.f32.mxu1 %vm458_vm3, %v349_v55 }
 0x1d3   :  { %866 = vmatmul.mubr.msk.f32.vlgmr.msra.gmra.mrb[8].mxu1 %vm458_vm3, %v350_v56 }
 0x1d4   :  { %872 = vmatpush3.msk.msra.mxu1 %vm471_vm2, %v746_v52 }
 0x1d6   :  { %v848_v57 = vpop.f32.mrb[2].mxu1 }
 0x1d7   :  { %v340_v58 = vpop.f32.mrb[3].mxu1  ;;  %v352_v60 = vmul.f32 0.0625, %v848_v57 }
 0x1d8   :  { %v351_v59 = vmul.f32 0.0625, %v340_v58 }
 0x1da   :  { %v859_v61 = vpop.f32.mrb[4].mxu1  ;;  %868 = vmatprep.mubr.msk.f32.mxu1 %vm458_vm3, %v351_v59 }
 0x1db   :  { %v435_v62 = vpop.f32.mrb[5].mxu1  ;;  %869 = vmatmul.mubr.msk.f32.gmra.mrb[10].mxu1 %vm458_vm3, %v352_v60  ;;  %v455_v0 = vmul.f32 0.0625, %v859_v61 }
 0x1dc   :  { %v454_v63 = vmul.f32 0.0625, %v435_v62 }
 0x1de   :  { %v862_v1 = vpop.f32.mrb[6].mxu1  ;;  %873 = vmatprep.mubr.msk.f32.mxu1 %vm458_vm3, %v454_v63 }
 0x1df   :  { %v445_v2 = vpop.f32.mrb[7].mxu1  ;;  %874 = vmatmul.mubr.msk.f32.vlgmr.msra.gmra.mrb[12].mxu1 %vm458_vm3, %v455_v0  ;;  %v457_v4 = vmul.f32 0.0625, %v862_v1 }
 0x1e0   :  { %v456_v3 = vmul.f32 0.0625, %v445_v2 }
 0x1e2   :  { %876 = vmatprep.mubr.msk.f32.mxu1 %vm458_vm3, %v456_v3 }
 0x1e3   :  { %877 = vmatmul.mubr.msk.f32.gmra.mrb[14].mxu1 %vm458_vm3, %v457_v4 }
 0x2a6   :  { %v867_v5 = vpop.f32.mrb[8].mxu1 }
 0x2a7   :  { %v541_v6 = vpop.f32.mrb[9].mxu1  ;;  %v658_v9 = vmul.f32 %v867_v5, %v867_v5  ;;  %v670_v29 = vsub.f32 %v1035_v37, %v867_v5 }
 0x2a8   :  { %v657_v10 = vmul.f32 %v541_v6, %v541_v6  ;;  %v669_v31 = vsub.f32 %v1033_v34, %v541_v6 }
 0x2ae   :  { %v870_v7 = vpop.f32.mrb[10].mxu1 }
 0x2af   :  { %v551_v8 = vpop.f32.mrb[11].mxu1  ;;  %v660_v15 = vmul.f32 %v870_v7, %v870_v7  ;;  %v672_v36 = vsub.f32 %v1049_v43, %v870_v7 }
 0x2b0   :  { %v659_v17 = vmul.f32 %v551_v8, %v551_v8  ;;  %v671_v41 = vsub.f32 %v1045_v40, %v551_v8 }
 0x2b2   :  { %v875_v11 = vpop.f32.mrb[12].mxu1 }
 0x2b3   :  { %v662_v12 = vsub.f32 %v875_v11, %v658_v9  ;;  %v638_v13 = vpop.f32.mrb[13].mxu1 }
 0x2b4   :  { %v661_v14 = vsub.f32 %v638_v13, %v657_v10 }
 0x2b5   :  { %v666_v16 = vmax.f32 %v662_v12, 0.0 }
 0x2b6   :  { %v665_v18 = vmax.f32 %v661_v14, 0.0  ;;  %v878_v19 = vpop.f32.mrb[14].mxu1 }
 0x2b7   :  { %v674_v20 = vadd.f32 1e-05, %v666_v16  ;;  %v664_v21 = vsub.f32 %v878_v19, %v660_v15  ;;  %v648_v22 = vpop.f32.mrb[15].mxu1 }
 0x2b8   :  { %v673_v23 = vadd.f32 1e-05, %v665_v18  ;;  %v663_v24 = vsub.f32 %v648_v22, %v659_v17 }
 0x2b9   :  { %919 = vrsqrt.f32 %v674_v20  ;;  %v668_v25 = vmax.f32 %v664_v21, 0.0 }
 0x2ba   :  { %921 = vrsqrt.f32 %v673_v23  ;;  %v667_v26 = vmax.f32 %v663_v24, 0.0 }
 0x2bb   :  { %v676_v27 = vadd.f32 1e-05, %v668_v25 }
 0x2bc   :  { %v675_v28 = vadd.f32 1e-05, %v667_v26 }
 0x2bd   :  { %923 = vrsqrt.f32 %v676_v27 }
 0x2be   :  { %925 = vrsqrt.f32 %v675_v28 }
 0x2c3   :  { %v920_v30 = vpop.eup %919 }
 0x2c4   :  { %v922_v32 = vpop.eup %921  ;;  %v682_v33 = vmul.f32 %v920_v30, %v670_v29 }
 0x2c5   :  { %v681_v35 = vmul.f32 %v922_v32, %v669_v31 }
 0x2c6   :  { %vm686_vm4 = vcmp.ge.f32.partialorder %v682_v33, 0.0  ;;  %v690_v38 = vmul.f32 0.2, %v682_v33 }
 0x2c7   :  { %v924_v39 = vpop.eup %923  ;;  %vm685_vm5 = vcmp.ge.f32.partialorder %v681_v35, 0.0  ;;  %v689_v42 = vmul.f32 0.2, %v681_v35 }
 0x2c8   :  { %v926_v44 = vpop.eup %925  ;;  %v694_v45 = vsel %vm686_vm4, %v682_v33, %v690_v38  ;;  %v684_v46 = vmul.f32 %v924_v39, %v672_v36 }
 0x2c9   :  { %v778_v37 = vpack.c.bf16 %v694_v45, %v694_v45  ;;  %v693_v47 = vsel %vm685_vm5, %v681_v35, %v689_v42  ;;  %v683_v48 = vmul.f32 %v926_v44, %v671_v41 }
 0x2ca   :  { %v777_v34 = vpack.c.bf16 %v693_v47, %v693_v47  ;;  %vm688_vm7 = vcmp.ge.f32.partialorder %v684_v46, 0.0  ;;  %v692_v49 = vmul.f32 0.2, %v684_v46 }
 0x2cb   :  { %715 = vst.msk [vmem:[%s1101_s2 + $0x4] sm:$0xf] %vm713_vm6, %v778_v37  ;;  %vm687_vm8 = vcmp.ge.f32.partialorder %v683_v48, 0.0  ;;  %v691_v43 = vmul.f32 0.2, %v683_v48 }
 0x2cc   :  { %714 = vst.msk [vmem:[%s1101_s2] sm:$0xf] %vm713_vm6, %v777_v34  ;;  %v696_v40 = vsel %vm688_vm7, %v684_v46, %v692_v49 }
 0x2cd   :  { %v780_v50 = vpack.c.bf16 %v696_v40, %v696_v40  ;;  %v695_v51 = vsel %vm687_vm8, %v683_v48, %v691_v43 }
 0x2ce   :  { %v779_v52 = vpack.c.bf16 %v695_v51, %v695_v51 }
 0x2cf   :  { %717 = vst.msk [vmem:[%s1101_s2 + $0xc] sm:$0xf] %vm713_vm6, %v780_v50 }
 0x2d0   :  { %716 = vst.msk [vmem:[%s1101_s2 + $0x8] sm:$0xf] %vm713_vm6, %v779_v52 }

// kernel: discriminator_forward.8
= control target key start
LH: loop header
LB: loop body
LE: loop exit
PB: predicated region body
PF: predicated region fallthrough
CT: control target
= control target key end

     0   :  { %v494_v24 = vlaneseq  ;;  %v1574_v49 = vmov 1.0|1.0   ;;  %v1575_v57 = vmov 0.0   ;;  %vm551_vm10 = vcmask 1041408   ;;  %s1881_s0 = inlined_call_operand.vmem [shape: bf16[1,512,18], index: 0, kind: input, shape index: {}]   ;;  %s1882_s1 = inlined_call_operand.vmem [shape: bf16[64,512], index: 1, kind: input, shape index: {}]   ;;  %s1883_s2 = inlined_call_operand.vmem [shape: bf16[1,64,18], index: 2, kind: output, shape index: {}]  }
   0x1   :  { %v1502_v0 = vld [vmem:[%s1881_s0 + $0x40] sm:$0xff]   ;;  %v1506_v4 = vld [vmem:[%s1881_s0 + $0x48] sm:$0xff]   ;;  %v1510_v8 = vld [vmem:[%s1881_s0 + $0x50] sm:$0xff]   ;;  %vm526_vm11 = vcmask 146432   ;;  %vm813_vm15 = vcmask 15360  }
   0x2   :  { %v1503_v1 = vld [vmem:[%s1881_s0 + $0xc0] sm:$0xff]   ;;  %1308 = vmatprep.subr.bf16.mxu0 %v1502_v0  ;;  %v1507_v5 = vld [vmem:[%s1881_s0 + $0xc8] sm:$0xff]   ;;  %v1511_v9 = vld [vmem:[%s1881_s0 + $0xd0] sm:$0xff]   ;;  %v1675_v29 = vand.u32 127, %v494_v24  ;;  %v1693_v36 = vshrl.u32 %v494_v24, 7 }
   0x3   :  { %v1504_v2 = vld [vmem:[%s1881_s0] sm:$0xff]   ;;  %1348 = vmatprep.subr.bf16.mxu1 %v1503_v1  ;;  %v1508_v6 = vld [vmem:[%s1881_s0 + $0x8] sm:$0xff]   ;;  %v1512_v10 = vld [vmem:[%s1881_s0 + $0x10] sm:$0xff]  }
   0x4   :  { %v1505_v3 = vld [vmem:[%s1881_s0 + $0x80] sm:$0xff]   ;;  %1309 = vmatpush3.bf16.msra.mxu0 %v1504_v2  ;;  %v1509_v7 = vld [vmem:[%s1881_s0 + $0x88] sm:$0xff]   ;;  %v1513_v11 = vld [vmem:[%s1881_s0 + $0x90] sm:$0xff]   ;;  %v504_v34 = vadd.s32 1, %v1675_v29  ;;  %v500_v41 = vmul.u32 9, %v1675_v29  ;;  %v496_v44 = vadd.s32 8, %v1693_v36 }
   0x5   :  { %1349 = vmatpush3.bf16.msra.mxu1 %v1505_v3  ;;  %1310 = vmatprep.subr.bf16.mxu0 %v1506_v4  ;;  %v1514_v12 = vld [vmem:[%s1881_s0 + $0x58] sm:$0xff]   ;;  %v1518_v16 = vld [vmem:[%s1881_s0 + $0x60] sm:$0xff]   ;;  %v1522_v20 = vld [vmem:[%s1881_s0 + $0x68] sm:$0xff]   ;;  %v497_v56 = vadd.s32 16, %v1693_v36 }
   0x6   :  { %1350 = vmatprep.subr.bf16.mxu1 %v1507_v5  ;;  %v1515_v13 = vld [vmem:[%s1881_s0 + $0xd8] sm:$0xff]   ;;  %v1519_v17 = vld [vmem:[%s1881_s0 + $0xe0] sm:$0xff]   ;;  %v1523_v21 = vld [vmem:[%s1881_s0 + $0xe8] sm:$0xff]   ;;  %v505_v42 = vmul.u32 9, %v504_v34  ;;  %vm501_vm0 = vcmp.ge.s32.totalorder %v1693_v36, %v500_v41  ;;  %vm502_vm2 = vcmp.ge.s32.totalorder %v496_v44, %v500_v41 }
   0x7   :  { %v1516_v14 = vld [vmem:[%s1881_s0 + $0x18] sm:$0xff]   ;;  %v1520_v18 = vld [vmem:[%s1881_s0 + $0x20] sm:$0xff]   ;;  %v1524_v22 = vld [vmem:[%s1881_s0 + $0x28] sm:$0xff]   ;;  %vm503_vm7 = vcmp.ge.s32.totalorder %v497_v56, %v500_v41 }
   0x8   :  { %1311 = vmatpush3.bf16.msra.mxu0 %v1508_v6  ;;  %v1517_v15 = vld [vmem:[%s1881_s0 + $0x98] sm:$0xff]   ;;  %v1521_v19 = vld [vmem:[%s1881_s0 + $0xa0] sm:$0xff]   ;;  %v1525_v23 = vld [vmem:[%s1881_s0 + $0xa8] sm:$0xff]   ;;  %vm506_vm1 = vcmp.lt.s32.totalorder %v1693_v36, %v505_v42  ;;  %vm507_vm3 = vcmp.lt.s32.totalorder %v496_v44, %v505_v42  ;;  %vm508_vm8 = vcmp.lt.s32.totalorder %v497_v56, %v505_v42 }
   0x9   :  { %1351 = vmatpush3.bf16.msra.mxu1 %v1509_v7  ;;  %1312 = vmatprep.subr.bf16.mxu0 %v1510_v8  ;;  %v1526_v25 = vld [vmem:[%s1881_s0 + $0x70] sm:$0xff]   ;;  %v1530_v30 = vld [vmem:[%s1881_s0 + $0x78] sm:$0xff]   ;;  %vm509_vm4 = vmand %vm501_vm0, %vm506_vm1 }
   0xa   :  { %1352 = vmatprep.subr.bf16.mxu1 %v1511_v9  ;;  %v1527_v26 = vld [vmem:[%s1881_s0 + $0xf0] sm:$0xff]   ;;  %v1531_v31 = vld [vmem:[%s1881_s0 + $0xf8] sm:$0xff]   ;;  %vm510_vm5 = vmand %vm502_vm2, %vm507_vm3  ;;  %vm1187_vm2 = vcmask 142336  }
   0xb   :  { %v1528_v27 = vld [vmem:[%s1881_s0 + $0x30] sm:$0xff]   ;;  %v1532_v32 = vld [vmem:[%s1881_s0 + $0x38] sm:$0xff]   ;;  %vm1492_vm6 = vmpackc.low %vm510_vm5, %vm509_vm4 }
   0xc   :  { %1313 = vmatpush3.bf16.msra.mxu0 %v1512_v10  ;;  %v1529_v28 = vld [vmem:[%s1881_s0 + $0xb0] sm:$0xff]   ;;  %v1533_v33 = vld [vmem:[%s1881_s0 + $0xb8] sm:$0xff]   ;;  %vm511_vm9 = vmand %vm503_vm7, %vm508_vm8 }
   0xd   :  { %1353 = vmatpush3.bf16.msra.mxu1 %v1513_v11  ;;  %1314 = vmatprep.subr.bf16.mxu0 %v1514_v12  ;;  %v1534_v35 = vld [vmem:[%s1882_s1] ss:$16 sps:$4 sm:$0xff]   ;;  %v1536_v37 = vld [vmem:[%s1882_s1 + $0x4] ss:$16 sps:$4 sm:$0xff]   ;;  %v1537_v38 = vld [vmem:[%s1882_s1 + $0x8] ss:$16 sps:$4 sm:$0xff]  }
   0xe   :  { %1354 = vmatprep.subr.bf16.mxu1 %v1515_v13  ;;  %v1539_v39 = vld [vmem:[%s1882_s1 + $0xc] ss:$16 sps:$4 sm:$0xff]   ;;  %396 = vmatprep.mubr.bf16.mxu0 %v1536_v37  ;;  %v1540_v40 = vld [vmem:[%s1882_s1 + $0x24] ss:$16 sps:$4 sm:$0xff]   ;;  %v1544_v45 = vld [vmem:[%s1882_s1 + $0x20] ss:$16 sps:$4 sm:$0xff]  }
   0xf   :  { %461 = vmatprep.mubr.bf16.mxu1 %v1539_v39  ;;  %v1542_v43 = vld [vmem:[%s1882_s1 + $0x2c] ss:$16 sps:$4 sm:$0xff]   ;;  %v1545_v46 = vld [vmem:[%s1882_s1 + $0x28] ss:$16 sps:$4 sm:$0xff]   ;;  %v1546_v47 = vld [vmem:[%s1882_s1 + $0x44] ss:$16 sps:$4 sm:$0xff]  }
  0x10   :  { %1315 = vmatpush3.bf16.msra.mxu0 %v1516_v14  ;;  %v1548_v48 = vld [vmem:[%s1882_s1 + $0x4c] ss:$16 sps:$4 sm:$0xff]   ;;  %v1550_v50 = vld [vmem:[%s1882_s1 + $0x40] ss:$16 sps:$4 sm:$0xff]   ;;  %v1551_v51 = vld [vmem:[%s1882_s1 + $0x48] ss:$16 sps:$4 sm:$0xff]  }
  0x11   :  { %1355 = vmatpush3.bf16.msra.mxu1 %v1517_v15  ;;  %1316 = vmatprep.subr.bf16.mxu0 %v1518_v16  ;;  %v1552_v52 = vld [vmem:[%s1882_s1 + $0x64] ss:$16 sps:$4 sm:$0xff]   ;;  %v1554_v53 = vld [vmem:[%s1882_s1 + $0x6c] ss:$16 sps:$4 sm:$0xff]   ;;  %v1556_v54 = vld [vmem:[%s1882_s1 + $0x60] ss:$16 sps:$4 sm:$0xff]  }
  0x12   :  { %1356 = vmatprep.subr.bf16.mxu1 %v1519_v17  ;;  %v1557_v55 = vld [vmem:[%s1882_s1 + $0x68] ss:$16 sps:$4 sm:$0xff]   ;;  %v1250_v58 = vsel %vm511_vm9, 1.0, %v1575_v57 }
  0x14   :  { %1317 = vmatpush3.bf16.msra.mxu0 %v1520_v18 }
  0x15   :  { %1357 = vmatpush3.bf16.msra.mxu1 %v1521_v19  ;;  %1318 = vmatprep.subr.bf16.mxu0 %v1522_v20 }
  0x16   :  { %1358 = vmatprep.subr.bf16.mxu1 %v1523_v21 }
  0x18   :  { %1319 = vmatpush3.bf16.msra.mxu0 %v1524_v22 }
  0x19   :  { %1359 = vmatpush3.bf16.msra.mxu1 %v1525_v23  ;;  %1320 = vmatprep.subr.bf16.mxu0 %v1526_v25 }
  0x1a   :  { %1360 = vmatprep.subr.bf16.mxu1 %v1527_v26 }
  0x1c   :  { %1321 = vmatpush3.bf16.msra.mxu0 %v1528_v27 }
  0x1d   :  { %1361 = vmatpush3.bf16.msra.mxu1 %v1529_v28  ;;  %1322 = vmatprep.subr.bf16.mxu0 %v1530_v30 }
  0x1e   :  { %1362 = vmatprep.subr.bf16.mxu1 %v1531_v31 }
  0x20   :  { %1323 = vmatpush3.bf16.msra.mxu0 %v1532_v32 }
  0x21   :  { %1363 = vmatpush3.bf16.msra.mxu1 %v1533_v33  ;;  %1493 = vmatprep.subr.msk.bf16.mxu0 %vm1492_vm6, %v1574_v49 }
  0x22   :  { %1497 = vmatprep.subr.msk.bf16.mxu1 %vm1492_vm6, %v1574_v49 }
  0x23   :  { %397 = vmatmul.mubr.bf16.vlgmr.msra.gmra.mrb[0].mxu0 %v1534_v35 }
  0x24   :  { %462 = vmatmul.mubr.bf16.vlgmr.msra.gmra.mrb[0].mxu1 %v1537_v38  ;;  %404 = vmatprep.mubr.bf16.mxu0 %v1540_v40 }
  0x25   :  { %469 = vmatprep.mubr.bf16.mxu1 %v1542_v43  ;;  %1495 = vmatpush3.bf16.msk.msra.mxu0 %vm1492_vm6, %v1574_v49 }
  0x26   :  { %1499 = vmatpush3.bf16.msk.msra.mxu1 %vm1492_vm6, %v1574_v49  ;;  %1432 = vmatprep.subr.msk.mxu0 %vm551_vm10, %v1250_v58 }
  0x27   :  { %1450 = vmatprep.subr.msk.mxu1 %vm551_vm10, %v1250_v58 }
  0x29   :  { %1433 = vmatpush3.msk.msra.mxu0 %vm551_vm10, %v1250_v58 }
  0x2a   :  { %1451 = vmatpush3.msk.msra.mxu1 %vm551_vm10, %v1250_v58 }
  0x2b   :  { %405 = vmatmul.mubr.bf16.gmra.mrb[4].mxu0 %v1544_v45 }
  0x2c   :  { %470 = vmatmul.mubr.bf16.gmra.mrb[4].mxu1 %v1545_v46  ;;  %412 = vmatprep.mubr.bf16.mxu0 %v1546_v47 }
  0x2d   :  { %477 = vmatprep.mubr.bf16.mxu1 %v1548_v48 }
  0x33   :  { %413 = vmatmul.mubr.bf16.gmra.mrb[8].mxu0 %v1550_v50 }
  0x34   :  { %478 = vmatmul.mubr.bf16.gmra.mrb[8].mxu1 %v1551_v51  ;;  %420 = vmatprep.mubr.bf16.mxu0 %v1552_v52 }
  0x35   :  { %485 = vmatprep.mubr.bf16.mxu1 %v1554_v53 }
  0x3b   :  { %421 = vmatmul.mubr.bf16.gmra.mrb[12].mxu0 %v1556_v54 }
  0x3c   :  { %486 = vmatmul.mubr.bf16.gmra.mrb[12].mxu1 %v1557_v55 }
  0xf6   :  { %v1324_v59 = vpop.f32.mrb[0].mxu0 }
  0xf7   :  { %v1364_v60 = vpop.f32.mrb[0].mxu1  ;;  %v1325_v61 = vpop.f32.mrb[1].mxu0 }
  0xf8   :  { %v1326_v62 = vadd.f32 %v1325_v61, %v1324_v59  ;;  %v1365_v63 = vpop.f32.mrb[1].mxu1  ;;  %v1327_v0 = vpop.f32.mrb[2].mxu0 }
  0xf9   :  { %v1366_v1 = vadd.f32 %v1365_v63, %v1364_v60  ;;  %v1367_v2 = vpop.f32.mrb[2].mxu1  ;;  %v1328_v3 = vpop.f32.mrb[3].mxu0  ;;  %v518_v63 = vmul.u32 9, %v1693_v36 }
  0xfa   :  { %v1329_v4 = vadd.f32 %v1328_v3, %v1327_v0  ;;  %v1368_v5 = vpop.f32.mrb[3].mxu1 }
  0xfb   :  { %v1750_v6 = vadd.f32 %v1366_v1, %v1326_v62  ;;  %v1369_v7 = vadd.f32 %v1368_v5, %v1367_v2  ;;  %v520_v62 = vadd.s32 1, %v1693_v36  ;;  %vm519_vm12 = vcmp.ge.s32.totalorder %v1675_v29, %v518_v63 }
  0xfd   :  { %v668_v8 = vmul.f32 %v1750_v6, %v1750_v6  ;;  %v1754_v9 = vadd.f32 %v1369_v7, %v1329_v4  ;;  %1434 = vmatprep.mubr.msk.f32.mxu0 %vm526_vm11, %v1750_v6  ;;  %v521_v0 = vmul.u32 9, %v520_v62 }
  0xfe   :  { %v1330_v10 = vpop.f32.mrb[4].mxu0 }
  0xff   :  { %v669_v11 = vmul.f32 %v1754_v9, %v1754_v9  ;;  %v1370_v12 = vpop.f32.mrb[4].mxu1  ;;  %1435 = vmatmul.mubr.msk.f32.vlgmr.msra.gmra.mrb[16].mxu0 %vm526_vm11, %v1754_v9  ;;  %1452 = vmatprep.mubr.msk.f32.mxu1 %vm526_vm11, %v668_v8  ;;  %v1331_v13 = vpop.f32.mrb[5].mxu0  ;;  %vm522_vm13 = vcmp.lt.s32.totalorder %v1675_v29, %v521_v0 }
 0x100   :  { %v1332_v14 = vadd.f32 %v1331_v13, %v1330_v10  ;;  %v1371_v15 = vpop.f32.mrb[5].mxu1  ;;  %v1333_v16 = vpop.f32.mrb[6].mxu0  ;;  %vm523_vm14 = vmand %vm519_vm12, %vm522_vm13 }
 0x101   :  { %v1372_v17 = vadd.f32 %v1371_v15, %v1370_v12  ;;  %v1373_v18 = vpop.f32.mrb[6].mxu1  ;;  %1453 = vmatmul.mubr.msk.f32.vlgmr.msra.gmra.mrb[16].mxu1 %vm526_vm11, %v669_v11  ;;  %v1334_v19 = vpop.f32.mrb[7].mxu0  ;;  %v1251_v1 = vsel %vm523_vm14, 1.0, %v1575_v57 }
 0x102   :  { %v1335_v20 = vadd.f32 %v1334_v19, %v1333_v16  ;;  %v1374_v21 = vpop.f32.mrb[7].mxu1  ;;  %1464 = vmatprep.subr.msk.mxu0 %vm551_vm10, %v1251_v1  ;;  %1478 = vmatprep.subr.msk.mxu1 %vm551_vm10, %v1251_v1 }
 0x103   :  { %v1764_v22 = vadd.f32 %v1372_v17, %v1332_v14  ;;  %v1375_v23 = vadd.f32 %v1374_v21, %v1373_v18  ;;  %1465 = vmatpush3.msk.msra.mxu0 %vm551_vm10, %v1251_v1  ;;  %1479 = vmatpush3.msk.msra.mxu1 %vm551_vm10, %v1251_v1 }
 0x105   :  { %v670_v24 = vmul.f32 %v1764_v22, %v1764_v22  ;;  %v1768_v25 = vadd.f32 %v1375_v23, %v1335_v20  ;;  %1437 = vmatprep.mubr.msk.f32.mxu0 %vm526_vm11, %v1764_v22 }
 0x106   :  { %v1336_v26 = vpop.f32.mrb[8].mxu0 }
 0x107   :  { %v671_v27 = vmul.f32 %v1768_v25, %v1768_v25  ;;  %v1376_v28 = vpop.f32.mrb[8].mxu1  ;;  %1438 = vmatmul.mubr.msk.f32.gmra.mrb[18].mxu0 %vm526_vm11, %v1768_v25  ;;  %1455 = vmatprep.mubr.msk.f32.mxu1 %vm526_vm11, %v670_v24  ;;  %v1337_v30 = vpop.f32.mrb[9].mxu0 }
 0x108   :  { %v1338_v31 = vadd.f32 %v1337_v30, %v1336_v26  ;;  %v1377_v32 = vpop.f32.mrb[9].mxu1  ;;  %v1339_v33 = vpop.f32.mrb[10].mxu0 }
 0x109   :  { %v1378_v34 = vadd.f32 %v1377_v32, %v1376_v28  ;;  %v1379_v35 = vpop.f32.mrb[10].mxu1  ;;  %1456 = vmatmul.mubr.msk.f32.gmra.mrb[18].mxu1 %vm526_vm11, %v671_v27  ;;  %v1340_v37 = vpop.f32.mrb[11].mxu0 }
 0x10a   :  { %v1341_v38 = vadd.f32 %v1340_v37, %v1339_v33  ;;  %v1380_v39 = vpop.f32.mrb[11].mxu1 }
 0x10b   :  { %v1778_v40 = vadd.f32 %v1378_v34, %v1338_v31  ;;  %v1381_v41 = vadd.f32 %v1380_v39, %v1379_v35 }
 0x10d   :  { %v672_v42 = vmul.f32 %v1778_v40, %v1778_v40  ;;  %v1782_v43 = vadd.f32 %v1381_v41, %v1341_v38  ;;  %1440 = vmatprep.mubr.msk.f32.mxu0 %vm526_vm11, %v1778_v40 }
 0x10e   :  { %v1342_v44 = vpop.f32.mrb[12].mxu0 }
 0x10f   :  { %v673_v45 = vmul.f32 %v1782_v43, %v1782_v43  ;;  %v1382_v46 = vpop.f32.mrb[12].mxu1  ;;  %1441 = vmatmul.mubr.msk.f32.gmra.mrb[20].mxu0 %vm526_vm11, %v1782_v43  ;;  %1458 = vmatprep.mubr.msk.f32.mxu1 %vm526_vm11, %v672_v42  ;;  %v1343_v47 = vpop.f32.mrb[13].mxu0 }
 0x110   :  { %v1344_v48 = vadd.f32 %v1343_v47, %v1342_v44  ;;  %v1383_v49 = vpop.f32.mrb[13].mxu1  ;;  %v1345_v50 = vpop.f32.mrb[14].mxu0 }
 0x111   :  { %v1384_v51 = vadd.f32 %v1383_v49, %v1382_v46  ;;  %v1385_v52 = vpop.f32.mrb[14].mxu1  ;;  %1459 = vmatmul.mubr.msk.f32.gmra.mrb[20].mxu1 %vm526_vm11, %v673_v45  ;;  %v1346_v53 = vpop.f32.mrb[15].mxu0 }
 0x112   :  { %v1347_v54 = vadd.f32 %v1346_v53, %v1345_v50  ;;  %v1386_v55 = vpop.f32.mrb[15].mxu1 }
 0x113   :  { %v1792_v56 = vadd.f32 %v1384_v51, %v1344_v48  ;;  %v1387_v58 = vadd.f32 %v1386_v55, %v1385_v52 }
 0x115   :  { %v674_v59 = vmul.f32 %v1792_v56, %v1792_v56  ;;  %v1796_v60 = vadd.f32 %v1387_v58, %v1347_v54  ;;  %1443 = vmatprep.mubr.msk.f32.mxu0 %vm526_vm11, %v1792_v56 }
 0x117   :  { %v675_v61 = vmul.f32 %v1796_v60, %v1796_v60  ;;  %1444 = vmatmul.mubr.msk.f32.gmra.mrb[22].mxu0 %vm526_vm11, %v1796_v60  ;;  %1461 = vmatprep.mubr.msk.f32.mxu1 %vm526_vm11, %v674_v59 }
 0x119   :  { %1462 = vmatmul.mubr.msk.f32.gmra.mrb[22].mxu1 %vm526_vm11, %v675_v61 }
 0x1d2   :  { %v1436_v2 = vpop.f32.mrb[16].mxu0 }
 0x1d3   :  { %v621_v3 = vpop.f32.mrb[17].mxu0  ;;  %v661_v5 = vmul.f32 0.11111111, %v1436_v2 }
 0x1d4   :  { %v660_v36 = vmul.f32 0.11111111, %v621_v3  ;;  %v1454_v4 = vpop.f32.mrb[16].mxu1 }
 0x1d5   :  { %v766_v7 = vpop.f32.mrb[17].mxu1  ;;  %v806_v29 = vmul.f32 0.11111111, %v1454_v4 }
 0x1d6   :  { %v805_v8 = vmul.f32 0.11111111, %v766_v7  ;;  %1466 = vmatprep.mubr.msk.f32.mxu0 %vm813_vm15, %v660_v36 }
 0x1d7   :  { %1467 = vmatmul.mubr.msk.f32.vlgmr.msra.gmra.mrb[24].mxu0 %vm813_vm15, %v661_v5 }
 0x1d8   :  { %1480 = vmatprep.mubr.msk.f32.mxu1 %vm813_vm15, %v805_v8 }
 0x1d9   :  { %1481 = vmatmul.mubr.msk.f32.vlgmr.msra.gmra.mrb[24].mxu1 %vm813_vm15, %v806_v29 }
 0x1da   :  { %v1439_v57 = vpop.f32.mrb[18].mxu0 }
 0x1db   :  { %v631_v10 = vpop.f32.mrb[19].mxu0  ;;  %v663_v13 = vmul.f32 0.11111111, %v1439_v57 }
 0x1dc   :  { %v662_v11 = vmul.f32 0.11111111, %v631_v10  ;;  %v1457_v12 = vpop.f32.mrb[18].mxu1 }
 0x1dd   :  { %v776_v14 = vpop.f32.mrb[19].mxu1  ;;  %v808_v16 = vmul.f32 0.11111111, %v1457_v12 }
 0x1de   :  { %v807_v15 = vmul.f32 0.11111111, %v776_v14  ;;  %1469 = vmatprep.mubr.msk.f32.mxu0 %vm813_vm15, %v662_v11 }
 0x1df   :  { %1470 = vmatmul.mubr.msk.f32.gmra.mrb[26].mxu0 %vm813_vm15, %v663_v13 }
 0x1e0   :  { %1483 = vmatprep.mubr.msk.f32.mxu1 %vm813_vm15, %v807_v15 }
 0x1e1   :  { %1484 = vmatmul.mubr.msk.f32.gmra.mrb[26].mxu1 %vm813_vm15, %v808_v16 }
 0x1e2   :  { %v1442_v17 = vpop.f32.mrb[20].mxu0 }
 0x1e3   :  { %v641_v18 = vpop.f32.mrb[21].mxu0  ;;  %v665_v21 = vmul.f32 0.11111111, %v1442_v17 }
 0x1e4   :  { %v664_v19 = vmul.f32 0.11111111, %v641_v18  ;;  %v1460_v20 = vpop.f32.mrb[20].mxu1 }
 0x1e5   :  { %v786_v23 = vpop.f32.mrb[21].mxu1  ;;  %v810_v26 = vmul.f32 0.11111111, %v1460_v20 }
 0x1e6   :  { %v809_v24 = vmul.f32 0.11111111, %v786_v23  ;;  %1472 = vmatprep.mubr.msk.f32.mxu0 %vm813_vm15, %v664_v19 }
 0x1e7   :  { %1473 = vmatmul.mubr.msk.f32.gmra.mrb[28].mxu0 %vm813_vm15, %v665_v21 }
 0x1e8   :  { %1486 = vmatprep.mubr.msk.f32.mxu1 %vm813_vm15, %v809_v24 }
 0x1e9   :  { %1487 = vmatmul.mubr.msk.f32.gmra.mrb[28].mxu1 %vm813_vm15, %v810_v26 }
 0x1ea   :  { %v1445_v27 = vpop.f32.mrb[22].mxu0 }
 0x1eb   :  { %v651_v28 = vpop.f32.mrb[23].mxu0  ;;  %v667_v32 = vmul.f32 0.11111111, %v1445_v27 }
 0x1ec   :  { %v666_v30 = vmul.f32 0.11111111, %v651_v28  ;;  %v1463_v31 = vpop.f32.mrb[22].mxu1 }
 0x1ed   :  { %v796_v33 = vpop.f32.mrb[23].mxu1  ;;  %v812_v35 = vmul.f32 0.11111111, %v1463_v31 }
 0x1ee   :  { %v811_v34 = vmul.f32 0.11111111, %v796_v33  ;;  %1475 = vmatprep.mubr.msk.f32.mxu0 %vm813_vm15, %v666_v30 }
 0x1ef   :  { %1476 = vmatmul.mubr.msk.f32.gmra.mrb[30].mxu0 %vm813_vm15, %v667_v32 }
 0x1f0   :  { %1489 = vmatprep.mubr.msk.f32.mxu1 %vm813_vm15, %v811_v34 }
 0x1f1   :  { %1490 = vmatmul.mubr.msk.f32.gmra.mrb[30].mxu1 %vm813_vm15, %v812_v35 }
 0x2aa   :  { %v1468_v37 = vpop.f32.mrb[24].mxu0 }
 0x2ab   :  { %v1076_v38 = vmul.f32 %v1468_v37, %v1468_v37  ;;  %v907_v39 = vpop.f32.mrb[25].mxu0  ;;  %v1100_v4 = vsub.f32 %v1754_v9, %v1468_v37 }
 0x2ac   :  { %v1075_v41 = vmul.f32 %v907_v39, %v907_v39  ;;  %v1482_v42 = vpop.f32.mrb[24].mxu1  ;;  %v1099_v29 = vsub.f32 %v1750_v6, %v907_v39 }
 0x2ad   :  { %v1084_v44 = vsub.f32 %v1482_v42, %v1076_v38  ;;  %v1036_v45 = vpop.f32.mrb[25].mxu1 }
 0x2ae   :  { %v1083_v46 = vsub.f32 %v1036_v45, %v1075_v41 }
 0x2af   :  { %v1092_v47 = vmax.f32 %v1084_v44, 0.0 }
 0x2b0   :  { %v1091_v48 = vmax.f32 %v1083_v46, 0.0 }
 0x2b1   :  { %v1108_v49 = vadd.f32 1e-05, %v1092_v47 }
 0x2b2   :  { %v1107_v50 = vadd.f32 1e-05, %v1091_v48  ;;  %v1471_v51 = vpop.f32.mrb[26].mxu0 }
 0x2b3   :  { %1558 = vrsqrt.f32 %v1108_v49  ;;  %v1078_v52 = vmul.f32 %v1471_v51, %v1471_v51  ;;  %v917_v53 = vpop.f32.mrb[27].mxu0  ;;  %v1102_v28 = vsub.f32 %v1768_v25, %v1471_v51 }
 0x2b4   :  { %1560 = vrsqrt.f32 %v1107_v50  ;;  %v1077_v54 = vmul.f32 %v917_v53, %v917_v53  ;;  %v1485_v55 = vpop.f32.mrb[26].mxu1  ;;  %v1101_v33 = vsub.f32 %v1764_v22, %v917_v53 }
 0x2b5   :  { %v1086_v58 = vsub.f32 %v1485_v55, %v1078_v52  ;;  %v1046_v59 = vpop.f32.mrb[27].mxu1 }
 0x2b6   :  { %v1085_v61 = vsub.f32 %v1046_v59, %v1077_v54 }
 0x2b7   :  { %v1094_v62 = vmax.f32 %v1086_v58, 0.0 }
 0x2b8   :  { %v1093_v63 = vmax.f32 %v1085_v61, 0.0 }
 0x2b9   :  { %v1110_v0 = vadd.f32 1e-05, %v1094_v62 }
 0x2ba   :  { %v1109_v1 = vadd.f32 1e-05, %v1093_v63  ;;  %v1831_v2 = vpop.f32.mrb[28].mxu0 }
 0x2bb   :  { %1562 = vrsqrt.f32 %v1110_v0  ;;  %v1080_v3 = vmul.f32 %v1831_v2, %v1831_v2  ;;  %v1835_v36 = vpop.f32.mrb[29].mxu0  ;;  %v1104_v51 = vsub.f32 %v1782_v43, %v1831_v2 }
 0x2bc   :  { %1564 = vrsqrt.f32 %v1109_v1  ;;  %v1079_v5 = vmul.f32 %v1835_v36, %v1835_v36  ;;  %v1488_v7 = vpop.f32.mrb[28].mxu1  ;;  %v1103_v53 = vsub.f32 %v1778_v40, %v1835_v36 }
 0x2bd   :  { %v1559_v8 = vpop.eup %1558  ;;  %v1088_v57 = vsub.f32 %v1488_v7, %v1080_v3  ;;  %v1056_v10 = vpop.f32.mrb[29].mxu1 }
 0x2be   :  { %v1561_v11 = vpop.eup %1560  ;;  %v1124_v12 = vmul.f32 %v1559_v8, %v1100_v4  ;;  %v1087_v13 = vsub.f32 %v1056_v10, %v1079_v5 }
 0x2bf   :  { %v1123_v14 = vmul.f32 %v1561_v11, %v1099_v29  ;;  %v1096_v15 = vmax.f32 %v1088_v57, 0.0 }
 0x2c0   :  { %vm1132_vm0 = vcmp.ge.f32.partialorder %v1124_v12, 0.0  ;;  %v1140_v16 = vmul.f32 0.2, %v1124_v12  ;;  %v1095_v17 = vmax.f32 %v1087_v13, 0.0 }
 0x2c1   :  { %vm1131_vm1 = vcmp.ge.f32.partialorder %v1123_v14, 0.0  ;;  %v1139_v9 = vmul.f32 0.2, %v1123_v14  ;;  %v1112_v18 = vadd.f32 1e-05, %v1096_v15 }
 0x2c2   :  { %v1148_v19 = vsel %vm1132_vm0, %v1124_v12, %v1140_v16  ;;  %v1111_v20 = vadd.f32 1e-05, %v1095_v17  ;;  %v1477_v21 = vpop.f32.mrb[30].mxu0 }
 0x2c3   :  { %v1301_v23 = vpack.c.bf16 %v1148_v19, %v1148_v19  ;;  %v1147_v24 = vsel %vm1131_vm1, %v1123_v14, %v1139_v9  ;;  %1566 = vrsqrt.f32 %v1112_v18  ;;  %v1082_v6 = vmul.f32 %v1477_v21, %v1477_v21  ;;  %v937_v26 = vpop.f32.mrb[31].mxu0 }
 0x2c4   :  { %v1300_v27 = vpack.c.bf16 %v1147_v24, %v1147_v24  ;;  %1568 = vrsqrt.f32 %v1111_v20  ;;  %v1081_v30 = vmul.f32 %v937_v26, %v937_v26  ;;  %v1491_v31 = vpop.f32.mrb[30].mxu1  ;;  %v1106_v1 = vsub.f32 %v1796_v60, %v1477_v21 }
 0x2c5   :  { %v1563_v32 = vpop.eup %1562  ;;  %1189 = vst.msk [vmem:[%s1883_s2 + $0x4] sm:$0xf] %vm1187_vm2, %v1301_v23  ;;  %v1090_v34 = vsub.f32 %v1491_v31, %v1082_v6  ;;  %v1066_v35 = vpop.f32.mrb[31].mxu1  ;;  %v1105_v40 = vsub.f32 %v1792_v56, %v937_v26 }
 0x2c6   :  { %v1565_v37 = vpop.eup %1564  ;;  %1188 = vst.msk [vmem:[%s1883_s2] sm:$0xf] %vm1187_vm2, %v1300_v27  ;;  %v1126_v25 = vmul.f32 %v1563_v32, %v1102_v28  ;;  %v1089_v38 = vsub.f32 %v1066_v35, %v1081_v30 }
 0x2c7   :  { %v1125_v39 = vmul.f32 %v1565_v37, %v1101_v33  ;;  %v1098_v41 = vmax.f32 %v1090_v34, 0.0 }
 0x2c8   :  { %vm1134_vm3 = vcmp.ge.f32.partialorder %v1126_v25, 0.0  ;;  %v1142_v42 = vmul.f32 0.2, %v1126_v25  ;;  %v1097_v44 = vmax.f32 %v1089_v38, 0.0 }
 0x2c9   :  { %vm1133_vm4 = vcmp.ge.f32.partialorder %v1125_v39, 0.0  ;;  %v1141_v45 = vmul.f32 0.2, %v1125_v39  ;;  %v1114_v46 = vadd.f32 1e-05, %v1098_v41 }
 0x2ca   :  { %v1150_v47 = vsel %vm1134_vm3, %v1126_v25, %v1142_v42  ;;  %v1113_v22 = vadd.f32 1e-05, %v1097_v44 }
 0x2cb   :  { %v1303_v48 = vpack.c.bf16 %v1150_v47, %v1150_v47  ;;  %v1149_v49 = vsel %vm1133_vm4, %v1125_v39, %v1141_v45  ;;  %1570 = vrsqrt.f32 %v1114_v46 }
 0x2cc   :  { %v1302_v50 = vpack.c.bf16 %v1149_v49, %v1149_v49  ;;  %1572 = vrsqrt.f32 %v1113_v22 }
 0x2cd   :  { %v1567_v52 = vpop.eup %1566  ;;  %1191 = vst.msk [vmem:[%s1883_s2 + $0xc] sm:$0xf] %vm1187_vm2, %v1303_v48 }
 0x2ce   :  { %v1569_v54 = vpop.eup %1568  ;;  %1190 = vst.msk [vmem:[%s1883_s2 + $0x8] sm:$0xf] %vm1187_vm2, %v1302_v50  ;;  %v1128_v55 = vmul.f32 %v1567_v52, %v1104_v51 }
 0x2cf   :  { %v1127_v58 = vmul.f32 %v1569_v54, %v1103_v53 }
 0x2d0   :  { %vm1136_vm5 = vcmp.ge.f32.partialorder %v1128_v55, 0.0  ;;  %v1144_v43 = vmul.f32 0.2, %v1128_v55 }
 0x2d1   :  { %vm1135_vm6 = vcmp.ge.f32.partialorder %v1127_v58, 0.0  ;;  %v1143_v59 = vmul.f32 0.2, %v1127_v58 }
 0x2d2   :  { %v1152_v61 = vsel %vm1136_vm5, %v1128_v55, %v1144_v43 }
 0x2d3   :  { %v1305_v62 = vpack.c.bf16 %v1152_v61, %v1152_v61  ;;  %v1151_v63 = vsel %vm1135_vm6, %v1127_v58, %v1143_v59 }
 0x2d4   :  { %v1304_v0 = vpack.c.bf16 %v1151_v63, %v1151_v63 }
 0x2d5   :  { %v1571_v2 = vpop.eup %1570  ;;  %1193 = vst.msk [vmem:[%s1883_s2 + $0x14] sm:$0xf] %vm1187_vm2, %v1305_v62 }
 0x2d6   :  { %v1573_v3 = vpop.eup %1572  ;;  %1192 = vst.msk [vmem:[%s1883_s2 + $0x10] sm:$0xf] %vm1187_vm2, %v1304_v0  ;;  %v1130_v36 = vmul.f32 %v1571_v2, %v1106_v1 }
 0x2d7   :  { %v1129_v4 = vmul.f32 %v1573_v3, %v1105_v40 }
 0x2d8   :  { %vm1138_vm7 = vcmp.ge.f32.partialorder %v1130_v36, 0.0  ;;  %v1146_v5 = vmul.f32 0.2, %v1130_v36 }
 0x2d9   :  { %vm1137_vm8 = vcmp.ge.f32.partialorder %v1129_v4, 0.0  ;;  %v1145_v60 = vmul.f32 0.2, %v1129_v4 }
 0x2da   :  { %v1154_v7 = vsel %vm1138_vm7, %v1130_v36, %v1146_v5 }
 0x2db   :  { %v1307_v8 = vpack.c.bf16 %v1154_v7, %v1154_v7  ;;  %v1153_v29 = vsel %vm1137_vm8, %v1129_v4, %v1145_v60 }
 0x2dc   :  { %v1306_v57 = vpack.c.bf16 %v1153_v29, %v1153_v29 }
 0x2dd   :  { %1195 = vst.msk [vmem:[%s1883_s2 + $0x1c] sm:$0xf] %vm1187_vm2, %v1307_v8 }
 0x2de   :  { %1194 = vst.msk [vmem:[%s1883_s2 + $0x18] sm:$0xf] %vm1187_vm2, %v1306_v57 }

// kernel: discriminator_forward.9
= control target key start
LH: loop header
LB: loop body
LE: loop exit
PB: predicated region body
PF: predicated region fallthrough
CT: control target
= control target key end

     0   :  { %v995_v1 = vmov 0   ;;  %v152_v24 = vlaneseq  ;;  %v996_v25 = vmov 1966171168   ;;  %vm764_vm0 = vcmask 57344   ;;  %s1235_s0 = inlined_call_operand.vmem [shape: bf16[1,1024,8], index: 0, kind: input, shape index: {}]   ;;  %s1236_s2 = inlined_call_operand.<no memory space> [shape: f32[1,1], index: 2, kind: input, shape index: {}]   ;;  %s1237_s1 = inlined_call_operand.vmem [shape: bf16[1,1024], index: 1, kind: input, shape index: {}]   ;;  %s1238_s3 = inlined_call_operand.vmem [shape: f32[1,1,8], index: 3, kind: output, shape index: {}]  }
   0x1   :  { %v926_v0 = vld [vmem:[%s1235_s0 + $0x40] sm:$0xff]   ;;  %925 = vset.pattern.permute.xlu0 %v995_v1  ;;  %v8_v2 = vstv %s1236_s2  ;;  %v930_v6 = vld [vmem:[%s1235_s0 + $0x48] sm:$0xff]   ;;  %v934_v10 = vld [vmem:[%s1235_s0 + $0x50] sm:$0xff]   ;;  %v159_v26 = vunpack.c.l.s4 %v996_v25 }
   0x2   :  { %v927_v3 = vld [vmem:[%s1235_s0 + $0xc0] sm:$0xff]   ;;  %9 = vst [vmem:[#allocation2] sm:$0x1] %v8_v2  ;;  %835 = vmatprep.subr.bf16.mxu0 %v926_v0  ;;  %v931_v7 = vld [vmem:[%s1235_s0 + $0xc8] sm:$0xff]   ;;  %v935_v11 = vld [vmem:[%s1235_s0 + $0xd0] sm:$0xff]   ;;  %v1098_v31 = vshrl.u32 %v152_v24, 7 }
   0x3   :  { %v928_v4 = vld [vmem:[%s1235_s0] sm:$0xff]   ;;  %857 = vmatprep.subr.bf16.mxu1 %v927_v3  ;;  %v932_v8 = vld [vmem:[%s1235_s0 + $0x8] sm:$0xff]   ;;  %v936_v12 = vld [vmem:[%s1235_s0 + $0x10] sm:$0xff]   ;;  %v160_v32 = vunpack.c.0.s8 %v159_v26 }
   0x4   :  { %v929_v5 = vld [vmem:[%s1235_s0 + $0x80] sm:$0xff]   ;;  %836 = vmatpush3.bf16.msra.mxu0 %v928_v4  ;;  %v933_v9 = vld [vmem:[%s1235_s0 + $0x88] sm:$0xff]   ;;  %v937_v13 = vld [vmem:[%s1235_s0 + $0x90] sm:$0xff]  }
   0x5   :  { %858 = vmatpush3.bf16.msra.mxu1 %v929_v5  ;;  %837 = vmatprep.subr.bf16.mxu0 %v930_v6  ;;  %v938_v14 = vld [vmem:[%s1235_s0 + $0x58] sm:$0xff]   ;;  %v942_v18 = vld [vmem:[%s1235_s0 + $0x60] sm:$0xff]   ;;  %v946_v22 = vld [vmem:[%s1235_s0 + $0x68] sm:$0xff]   ;;  %v1113_v37 = vsub.s32 %v160_v32, %v1098_v31 }
   0x6   :  { %859 = vmatprep.subr.bf16.mxu1 %v931_v7  ;;  %v939_v15 = vld [vmem:[%s1235_s0 + $0xd8] sm:$0xff]   ;;  %v943_v19 = vld [vmem:[%s1235_s0 + $0xe0] sm:$0xff]   ;;  %v947_v23 = vld [vmem:[%s1235_s0 + $0xe8] sm:$0xff]  }
   0x7   :  { %v940_v16 = vld [vmem:[%s1235_s0 + $0x18] sm:$0xff]   ;;  %v944_v20 = vld [vmem:[%s1235_s0 + $0x20] sm:$0xff]   ;;  %v948_v27 = vld [vmem:[%s1235_s0 + $0x28] sm:$0xff]  }
   0x8   :  { %838 = vmatpush3.bf16.msra.mxu0 %v932_v8  ;;  %v941_v17 = vld [vmem:[%s1235_s0 + $0x98] sm:$0xff]   ;;  %v945_v21 = vld [vmem:[%s1235_s0 + $0xa0] sm:$0xff]   ;;  %v949_v28 = vld [vmem:[%s1235_s0 + $0xa8] sm:$0xff]  }
   0x9   :  { %860 = vmatpush3.bf16.msra.mxu1 %v933_v9  ;;  %839 = vmatprep.subr.bf16.mxu0 %v934_v10  ;;  %v950_v29 = vld [vmem:[%s1235_s0 + $0x70] sm:$0xff]   ;;  %v954_v35 = vld [vmem:[%s1235_s0 + $0x78] sm:$0xff]   ;;  %v17_v40 = vld [vmem:[%s1237_s1] sm:$0xff] }
   0xa   :  { %861 = vmatprep.subr.bf16.mxu1 %v935_v11  ;;  %v951_v30 = vld [vmem:[%s1235_s0 + $0xf0] sm:$0xff]   ;;  %v955_v36 = vld [vmem:[%s1235_s0 + $0xf8] sm:$0xff]   ;;  %v157_v41 = vcombine.high %v17_v40, %v17_v40  ;;  %v164_v42 = vrot.slane %v17_v40, %v1113_v37  ;;  %v959_v43 = vld [vmem:[%s1235_s0 + $0x140] sm:$0xff]  }
   0xb   :  { %v952_v33 = vld [vmem:[%s1235_s0 + $0x30] sm:$0xff]   ;;  %v956_v38 = vld [vmem:[%s1235_s0 + $0x38] sm:$0xff]   ;;  %v960_v44 = vld [vmem:[%s1235_s0 + $0x1c0] sm:$0xff]  }
   0xc   :  { %840 = vmatpush3.bf16.msra.mxu0 %v936_v12  ;;  %v953_v34 = vld [vmem:[%s1235_s0 + $0xb0] sm:$0xff]   ;;  %v957_v39 = vld [vmem:[%s1235_s0 + $0xb8] sm:$0xff]   ;;  %v172_v45 = vcombine.high %v164_v42, %v164_v42  ;;  %v180_v46 = vrot.slane %v164_v42, %v1113_v37  ;;  %v1133_v47 = vrot.slane %v157_v41, %v1113_v37  ;;  %v961_v49 = vld [vmem:[%s1235_s0 + $0x100] sm:$0xff]  }
   0xd   :  { %862 = vmatpush3.bf16.msra.mxu1 %v937_v13  ;;  %841 = vmatprep.subr.bf16.mxu0 %v938_v14  ;;  %v963_v52 = vld [vmem:[%s1235_s0 + $0x148] sm:$0xff]   ;;  %v962_v54 = vld [vmem:[%s1235_s0 + $0x180] sm:$0xff]   ;;  %v967_v59 = vld [vmem:[%s1235_s0 + $0x150] sm:$0xff]  }
   0xe   :  { %863 = vmatprep.subr.bf16.mxu1 %v939_v15  ;;  %v194_v48 = vrot.slane %v172_v45, %v1113_v37  ;;  %v173_v50 = vcombine.high %v1133_v47, %v1133_v47  ;;  %v202_v51 = vcombine.high %v180_v46, %v180_v46  ;;  %v964_v56 = vld [vmem:[%s1235_s0 + $0x1c8] sm:$0xff]   ;;  %v968_v61 = vld [vmem:[%s1235_s0 + $0x1d0] sm:$0xff]   ;;  %v971_v63 = vld [vmem:[%s1235_s0 + $0x158] sm:$0xff]  }
   0xf   :  { %v965_v57 = vld [vmem:[%s1235_s0 + $0x108] sm:$0xff]   ;;  %v969_v62 = vld [vmem:[%s1235_s0 + $0x110] sm:$0xff]   ;;  %v972_v1 = vld [vmem:[%s1235_s0 + $0x1d8] sm:$0xff]  }
  0x10   :  { %842 = vmatpush3.bf16.msra.mxu0 %v940_v16  ;;  %630 = vmatprep.mubr.bf16.mxu0 %v194_v48  ;;  %v204_v53 = vcombine.high %v194_v48, %v194_v48  ;;  %v201_v55 = vrot.slane %v173_v50, %v1113_v37  ;;  %v966_v60 = vld [vmem:[%s1235_s0 + $0x188] sm:$0xff]   ;;  %v970_v0 = vld [vmem:[%s1235_s0 + $0x190] sm:$0xff]   ;;  %v973_v2 = vld [vmem:[%s1235_s0 + $0x118] sm:$0xff]  }
  0x11   :  { %864 = vmatpush3.bf16.msra.mxu1 %v941_v17  ;;  %843 = vmatprep.subr.bf16.mxu0 %v942_v18  ;;  %v975_v3 = vld [vmem:[%s1235_s0 + $0x160] sm:$0xff]   ;;  %v974_v4 = vld [vmem:[%s1235_s0 + $0x198] sm:$0xff]   ;;  %v979_v7 = vld [vmem:[%s1235_s0 + $0x168] sm:$0xff]  }
  0x12   :  { %865 = vmatprep.subr.bf16.mxu1 %v943_v19  ;;  %670 = vmatprep.mubr.bf16.mxu1 %v204_v53  ;;  %v205_v58 = vcombine.high %v201_v55, %v201_v55  ;;  %v976_v5 = vld [vmem:[%s1235_s0 + $0x1e0] sm:$0xff]   ;;  %v980_v9 = vld [vmem:[%s1235_s0 + $0x1e8] sm:$0xff]   ;;  %v983_v11 = vld [vmem:[%s1235_s0 + $0x170] sm:$0xff]  }
  0x13   :  { %v977_v6 = vld [vmem:[%s1235_s0 + $0x120] sm:$0xff]   ;;  %v981_v10 = vld [vmem:[%s1235_s0 + $0x128] sm:$0xff]   ;;  %v984_v13 = vld [vmem:[%s1235_s0 + $0x1f0] sm:$0xff]  }
  0x14   :  { %844 = vmatpush3.bf16.msra.mxu0 %v944_v20  ;;  %v978_v8 = vld [vmem:[%s1235_s0 + $0x1a0] sm:$0xff]   ;;  %v982_v12 = vld [vmem:[%s1235_s0 + $0x1a8] sm:$0xff]   ;;  %v985_v14 = vld [vmem:[%s1235_s0 + $0x130] sm:$0xff]   ;;  %v187_v20 = vrot.slane %v1133_v47, %v1113_v37 }
  0x15   :  { %866 = vmatpush3.bf16.msra.mxu1 %v945_v21  ;;  %845 = vmatprep.subr.bf16.mxu0 %v946_v22  ;;  %v987_v15 = vld [vmem:[%s1235_s0 + $0x178] sm:$0xff]   ;;  %v986_v16 = vld [vmem:[%s1235_s0 + $0x1b0] sm:$0xff]   ;;  %v146_v18 = vld [vmem:[#allocation2] sm:$0x1] }
  0x16   :  { %867 = vmatprep.subr.bf16.mxu1 %v947_v23  ;;  %v988_v17 = vld [vmem:[%s1235_s0 + $0x1f8] sm:$0xff]   ;;  %149 = vperm.xlu0 %925, %v146_v18   ;;  %v203_v22 = vcombine.high %v187_v20, %v187_v20  ;;  %v154_v23 = vsub.s32 0, %v1098_v31 }
  0x17   :  { %v989_v19 = vld [vmem:[%s1235_s0 + $0x138] sm:$0xff]  }
  0x18   :  { %846 = vmatpush3.bf16.msra.mxu0 %v948_v27  ;;  %v990_v21 = vld [vmem:[%s1235_s0 + $0x1b8] sm:$0xff]  }
  0x19   :  { %868 = vmatpush3.bf16.msra.mxu1 %v949_v28  ;;  %847 = vmatprep.subr.bf16.mxu0 %v950_v29 }
  0x1a   :  { %869 = vmatprep.subr.bf16.mxu1 %v951_v30 }
  0x1c   :  { %848 = vmatpush3.bf16.msra.mxu0 %v952_v33 }
  0x1d   :  { %870 = vmatpush3.bf16.msra.mxu1 %v953_v34  ;;  %849 = vmatprep.subr.bf16.mxu0 %v954_v35 }
  0x1e   :  { %871 = vmatprep.subr.bf16.mxu1 %v955_v36 }
  0x20   :  { %850 = vmatpush3.bf16.msra.mxu0 %v956_v38 }
  0x21   :  { %872 = vmatpush3.bf16.msra.mxu1 %v957_v39  ;;  %879 = vmatprep.subr.bf16.mxu0 %v959_v43 }
  0x22   :  { %901 = vmatprep.subr.bf16.mxu1 %v960_v44 }
  0x23   :  { %631 = vmatmul.mubr.bf16.vlgmr.msra.gmra.mrb[0].mxu0 %v180_v46 }
  0x24   :  { %880 = vmatpush3.bf16.msra.mxu0 %v961_v49  ;;  %671 = vmatmul.mubr.bf16.vlgmr.msra.gmra.mrb[0].mxu1 %v202_v51 }
  0x25   :  { %881 = vmatprep.subr.bf16.mxu0 %v963_v52  ;;  %902 = vmatpush3.bf16.msra.mxu1 %v962_v54 }
  0x26   :  { %710 = vmatprep.mubr.bf16.mxu0 %v201_v55  ;;  %903 = vmatprep.subr.bf16.mxu1 %v964_v56 }
  0x27   :  { %750 = vmatprep.mubr.bf16.mxu1 %v205_v58 }
  0x28   :  { %882 = vmatpush3.bf16.msra.mxu0 %v965_v57 }
  0x29   :  { %883 = vmatprep.subr.bf16.mxu0 %v967_v59  ;;  %904 = vmatpush3.bf16.msra.mxu1 %v966_v60 }
  0x2a   :  { %905 = vmatprep.subr.bf16.mxu1 %v968_v61 }
  0x2c   :  { %884 = vmatpush3.bf16.msra.mxu0 %v969_v62 }
  0x2d   :  { %885 = vmatprep.subr.bf16.mxu0 %v971_v63  ;;  %906 = vmatpush3.bf16.msra.mxu1 %v970_v0 }
  0x2e   :  { %907 = vmatprep.subr.bf16.mxu1 %v972_v1 }
  0x30   :  { %886 = vmatpush3.bf16.msra.mxu0 %v973_v2 }
  0x31   :  { %887 = vmatprep.subr.bf16.mxu0 %v975_v3  ;;  %908 = vmatpush3.bf16.msra.mxu1 %v974_v4 }
  0x32   :  { %909 = vmatprep.subr.bf16.mxu1 %v976_v5 }
  0x34   :  { %888 = vmatpush3.bf16.msra.mxu0 %v977_v6 }
  0x35   :  { %889 = vmatprep.subr.bf16.mxu0 %v979_v7  ;;  %910 = vmatpush3.bf16.msra.mxu1 %v978_v8 }
  0x36   :  { %911 = vmatprep.subr.bf16.mxu1 %v980_v9 }
  0x38   :  { %890 = vmatpush3.bf16.msra.mxu0 %v981_v10 }
  0x39   :  { %891 = vmatprep.subr.bf16.mxu0 %v983_v11  ;;  %912 = vmatpush3.bf16.msra.mxu1 %v982_v12 }
  0x3a   :  { %913 = vmatprep.subr.bf16.mxu1 %v984_v13 }
  0x3c   :  { %892 = vmatpush3.bf16.msra.mxu0 %v985_v14 }
  0x3d   :  { %893 = vmatprep.subr.bf16.mxu0 %v987_v15  ;;  %914 = vmatpush3.bf16.msra.mxu1 %v986_v16 }
  0x3e   :  { %915 = vmatprep.subr.bf16.mxu1 %v988_v17 }
  0x40   :  { %894 = vmatpush3.bf16.msra.mxu0 %v989_v19 }
  0x41   :  { %916 = vmatpush3.bf16.msra.mxu1 %v990_v21 }
  0x43   :  { %711 = vmatmul.mubr.bf16.vlgmr.msra.gmra.mrb[4].mxu0 %v187_v20 }
  0x44   :  { %751 = vmatmul.mubr.bf16.vlgmr.msra.gmra.mrb[4].mxu1 %v203_v22 }
  0x95   :  { %v150_v24 = vpop.permute.xlu0 %149 }
  0x96   :  { %v155_v26 = vrot.slane %v150_v24, %v154_v23 }
  0xf6   :  { %v851_v25 = vpop.f32.mrb[0].mxu0 }
  0xf7   :  { %v852_v27 = vpop.f32.mrb[1].mxu0  ;;  %v873_v28 = vpop.f32.mrb[0].mxu1 }
  0xf8   :  { %v853_v29 = vadd.f32 %v852_v27, %v851_v25  ;;  %v854_v30 = vpop.f32.mrb[2].mxu0  ;;  %v874_v32 = vpop.f32.mrb[1].mxu1 }
  0xf9   :  { %v855_v33 = vpop.f32.mrb[3].mxu0  ;;  %v875_v35 = vadd.f32 %v874_v32, %v873_v28  ;;  %v876_v36 = vpop.f32.mrb[2].mxu1 }
  0xfa   :  { %v633_v34 = vadd.f32 %v853_v29, %v155_v26  ;;  %v877_v37 = vpop.f32.mrb[3].mxu1 }
  0xfc   :  { %v673_v38 = vadd.f32 %v875_v35, %v633_v34 }
 0x116   :  { %v895_v39 = vpop.f32.mrb[4].mxu0 }
 0x117   :  { %v896_v40 = vpop.f32.mrb[5].mxu0  ;;  %v917_v41 = vpop.f32.mrb[4].mxu1 }
 0x118   :  { %v897_v42 = vadd.f32 %v896_v40, %v895_v39  ;;  %v898_v43 = vpop.f32.mrb[6].mxu0  ;;  %v918_v31 = vpop.f32.mrb[5].mxu1 }
 0x119   :  { %v899_v44 = vpop.f32.mrb[7].mxu0  ;;  %v919_v46 = vadd.f32 %v918_v31, %v917_v41  ;;  %v920_v47 = vpop.f32.mrb[6].mxu1 }
 0x11a   :  { %v713_v45 = vadd.f32 %v897_v42, %v673_v38  ;;  %v921_v48 = vpop.f32.mrb[7].mxu1 }
 0x11c   :  { %v753_v49 = vadd.f32 %v919_v46, %v713_v45 }
 0x11e   :  { %v834_v50 = vmul.f32 -1.442695, %v753_v49 }
 0x120   :  { %991 = vpow2.f32 %v834_v50 }
 0x12a   :  { %v992_v51 = vpop.eup %991 }
 0x12b   :  { %v761_v52 = vadd.f32 1.0, %v992_v51 }
 0x12d   :  { %993 = vrcp.f32 %v761_v52 }
 0x137   :  { %v994_v53 = vpop.eup %993 }
 0x138   :  { %765 = vst.msk [vmem:[%s1238_s3] sm:$0x1] %vm764_vm0, %v994_v53 }

</bundles_post_ra>
